<compile_context>
chip_gen: v6e
topology: v6e:2x2x1
jax: 0.10.0
libtpu: 0.0.40
codegen_flags: <defaults>
</compile_context>

<pallas_src>
import functools

import jax
import jax.numpy as jnp
from jax.experimental import pallas as pl
from jax.experimental.pallas import tpu as pltpu

WIDTH = 32              # bert.transformer.width
WIDTH_P = 128           # lane-padded width
MLP1_EMBD = 512         # module default mlp1_embd
MLP2_HID = (256, 128, 64)   # module default mlp2_hid_size
BN_EPS = 1e-5

# ---- packed weight slab layout: (row_offset, padded_fin, padded_fout) ------
R_W1A = 0       # [ 32,512] stored, read as [128,512]
R_W1B = 128     # [512, 32] stored, read as [512,128]
R_W20 = 640     # [ 32,256] stored, read as [128,256]
R_W21 = 768     # [256,128] stored, read as [256,128]
R_W22 = 1024    # [128, 64] stored, read as [128,128]
R_W23 = 1152    # [ 64,  2] stored, read as [128,128]
W_ROWS, W_COLS = 1280, 512

# ---- packed vector slab layout: column offsets (all 128-aligned) -----------
V_B1A, V_G1, V_BE1 = 0, 512, 1024
V_B1B = 1536
V_B20, V_G20, V_BE20 = 1664, 1920, 2176
V_B21, V_G21, V_BE21 = 2432, 2560, 2688
V_B22, V_G22, V_BE22 = 2816, 2944, 3072
V_B23 = 3200
V_TOTAL = 3328


def _quick_gelu(x):
    # QuickGELU: x * sigmoid(1.702 * x)   (sigmoid -> EUP)
    return x * jax.nn.sigmoid(1.702 * x)


def _batchnorm(x, gamma, beta):
    # nn.BatchNorm1d in its default (training) state: batch statistics,
    # biased variance.  Zero-padded columns stay exactly zero (gamma/beta
    # padding is zero).
    mean = jnp.mean(x, axis=0, keepdims=True)
    var = jnp.mean(jnp.square(x - mean), axis=0, keepdims=True)
    return gamma * (x - mean) * jax.lax.rsqrt(var + BN_EPS) + beta


def task_pred_kernel(x_ref, w_ref, v_ref, out_ref, *, siamese):
    x = x_ref[...]                             # [B, S, 2*WIDTH_P]
    emb_p = x[:, :, :WIDTH_P]                  # padded embeddings (pad = 0)
    mask_p = x[:, :, WIDTH_P:]                 # validity mask (broadcast lanes)

    def vec(off, n):                           # [1, n] slice of vector slab
        return v_ref[:, off:off + n]

    def wmat(row, fin, fout):                  # padded weight block
        return w_ref[row:row + fin, 0:fout]

    # get_bert_embd: per-sample mean over tokens [1, len-1) -> masked mean.
    num = jnp.sum(emb_p * mask_p, axis=1)                    # [B, WIDTH_P]
    # clamp only guards all-masked rows (where the torch module would NaN)
    denom = jnp.maximum(jnp.sum(mask_p, axis=1), 1.0)        # [B, WIDTH_P]
    reps_p = num * pl.reciprocal(denom, approx=True)         # [B, WIDTH_P]

    if siamese:
        h = jnp.dot(reps_p, wmat(R_W1A, 128, 512),
                    preferred_element_type=jnp.float32) + vec(V_B1A, 512)
        h = _quick_gelu(_batchnorm(h, vec(V_G1, 512), vec(V_BE1, 512)))
        h = jnp.dot(h, wmat(R_W1B, 512, 128),
                    preferred_element_type=jnp.float32) + vec(V_B1B, 128)
        x1 = h + reps_p                                      # [B, 128]
    else:
        x1 = reps_p

    # mlp2 stack (all feature dims padded to multiples of 128)
    h = jnp.dot(x1, wmat(R_W20, 128, 256),
                preferred_element_type=jnp.float32) + vec(V_B20, 256)
    h = _quick_gelu(_batchnorm(h, vec(V_G20, 256), vec(V_BE20, 256)))

    h = jnp.dot(h, wmat(R_W21, 256, 128),
                preferred_element_type=jnp.float32) + vec(V_B21, 128)
    h = _quick_gelu(_batchnorm(h, vec(V_G21, 128), vec(V_BE21, 128)))

    h = jnp.dot(h, wmat(R_W22, 128, 128),
                preferred_element_type=jnp.float32) + vec(V_B22, 128)
    h = _quick_gelu(_batchnorm(h, vec(V_G22, 128), vec(V_BE22, 128)))

    logits_p = jnp.dot(h, wmat(R_W23, 128, 128),
                       preferred_element_type=jnp.float32) + vec(V_B23, 128)

    # single lane-dense [B, 256] store: [mlp1_embd_pad | logits_pad]
    out_ref[...] = jnp.concatenate([x1, logits_p], axis=1)


def pack_params(params):
    """Pack the 20 module parameters into (wslab [1280,512], vslab [1,3328])."""
    (w1a, b1a, g1, be1, w1b, b1b,
     w20, b20, g20, be20, w21, b21, g21, be21,
     w22, b22, g22, be22, w23, b23) = params

    wslab = jnp.zeros((W_ROWS, W_COLS), jnp.float32)

    def put_w(slab, w, row):
        return slab.at[row:row + w.shape[0], 0:w.shape[1]].set(w)

    wslab = put_w(wslab, w1a, R_W1A)
    wslab = put_w(wslab, w1b, R_W1B)
    wslab = put_w(wslab, w20, R_W20)
    wslab = put_w(wslab, w21, R_W21)
    wslab = put_w(wslab, w22, R_W22)
    wslab = put_w(wslab, w23, R_W23)

    vslab = jnp.zeros((1, V_TOTAL), jnp.float32)
    for v, off in ((b1a, V_B1A), (g1, V_G1), (be1, V_BE1), (b1b, V_B1B),
                   (b20, V_B20), (g20, V_G20), (be20, V_BE20),
                   (b21, V_B21), (g21, V_G21), (be21, V_BE21),
                   (b22, V_B22), (g22, V_G22), (be22, V_BE22),
                   (b23, V_B23)):
        vslab = vslab.at[:, off:off + v.shape[1]].set(v)
    return wslab, vslab


def task_pred_forward(emb, mask, params, siamese=True):
    """emb: [B,S,W] f32, mask: [B,S,1] f32, params: list of 20 arrays.

    Returns (mlp2_output [B,2], mlp1_embd [B,W]) like the module's forward().
    """
    B, S, _ = emb.shape
    wslab, vslab = pack_params(params)

    # lane-dense combined input slab: [emb padded 32->128 | mask broadcast]
    emb_p = jnp.pad(emb.astype(jnp.float32),
                    ((0, 0), (0, 0), (0, WIDTH_P - WIDTH)))
    mask_b = jnp.broadcast_to(mask.astype(jnp.float32), (B, S, WIDTH_P))
    xslab = jnp.concatenate([emb_p, mask_b], axis=-1)        # [B, S, 256]

    kernel = functools.partial(task_pred_kernel, siamese=siamese)
    vmem = pltpu.MemorySpace.VMEM

    flops = 2 * B * (WIDTH * MLP1_EMBD + MLP1_EMBD * WIDTH
                     + WIDTH * 256 + 256 * 128 + 128 * 64 + 64 * 2)
    transcendentals = 2 * B * (MLP1_EMBD + 256 + 128 + 64)
    bytes_accessed = 4 * int(xslab.size + W_ROWS * W_COLS + V_TOTAL
                             + B * 2 * WIDTH_P)

    out = pl.pallas_call(
        kernel,
        out_shape=jax.ShapeDtypeStruct((B, 2 * WIDTH_P), jnp.float32),
        in_specs=[pl.BlockSpec(memory_space=vmem)] * 3,
        out_specs=pl.BlockSpec(memory_space=vmem),
        cost_estimate=pl.CostEstimate(flops=flops,
                                      transcendentals=transcendentals,
                                      bytes_accessed=bytes_accessed),
    )(xslab, wslab, vslab)

    mlp1_embd = out[:, :WIDTH]
    mlp2_output = out[:, WIDTH_P:WIDTH_P + 2]
    return mlp2_output, mlp1_embd


def init_params(key):
    """Deterministic params matching the nn.Module __init__ shapes."""
    def lin(k, fin, fout):
        kw, kb = jax.random.split(k)
        lim = 1.0 / jnp.sqrt(jnp.float32(fin))
        w = jax.random.uniform(kw, (fin, fout), jnp.float32, -lim, lim)
        b = jax.random.uniform(kb, (1, fout), jnp.float32, -lim, lim)
        return w, b

    def bn(f):
        return jnp.ones((1, f), jnp.float32), jnp.zeros((1, f), jnp.float32)

    ks = list(jax.random.split(key, 8))
    params = []
    # mlp1: Linear(W, MLP1_EMBD), BN, QuickGELU, Linear(MLP1_EMBD, W)
    w, b = lin(ks[0], WIDTH, MLP1_EMBD)
    g, be = bn(MLP1_EMBD)
    params += [w, b, g, be]
    w, b = lin(ks[1], MLP1_EMBD, WIDTH)
    params += [w, b]
    # mlp2: [Linear, BN, QuickGELU] x 3 + Linear(.., 2)
    dims = (WIDTH,) + MLP2_HID
    for i in range(len(MLP2_HID)):
        w, b = lin(ks[2 + i], dims[i], dims[i + 1])
        g, be = bn(dims[i + 1])
        params += [w, b, g, be]
    w, b = lin(ks[5], MLP2_HID[-1], 2)
    params += [w, b]
    return params


def ref_forward(emb, mask, params, siamese=True):
    """Pure-JAX reference for correctness checking."""
    (w1a, b1a, g1, be1, w1b, b1b,
     w20, b20, g20, be20, w21, b21, g21, be21,
     w22, b22, g22, be22, w23, b23) = params

    def bn(x, g, be):
        m = x.mean(0, keepdims=True)
        v = ((x - m) ** 2).mean(0, keepdims=True)
        return g * (x - m) * jax.lax.rsqrt(v + BN_EPS) + be

    def qg(x):
        return x * jax.nn.sigmoid(1.702 * x)

    reps = (emb * mask).sum(1) / mask.sum(1)
    if siamese:
        h = qg(bn(reps @ w1a + b1a, g1, be1)) @ w1b + b1b
        x1 = h + reps
    else:
        x1 = reps
    h = qg(bn(x1 @ w20 + b20, g20, be20))
    h = qg(bn(h @ w21 + b21, g21, be21))
    h = qg(bn(h @ w22 + b22, g22, be22))
    return h @ w23 + b23, x1


if __name__ == "__main__":
    key = jax.random.PRNGKey(0)
    k_emb, k_len, k_par = jax.random.split(key, 3)

    B, S = 8, 16
    # TODO(synk): BERT tokenization + transformer encoder not reimplemented;
    # embeddings are synthetic stand-ins for bert.embed(tokens).
    emb = jax.random.normal(k_emb, (B, S, WIDTH), jnp.float32)

    # per-sample token lengths (>= 5 so the [1, len-1) window is non-empty)
    lens = jax.random.randint(k_len, (B,), 5, S + 1)
    pos = jnp.arange(S)[None, :]
    mask = ((pos >= 1) & (pos <= lens[:, None] - 2)).astype(jnp.float32)
    mask = mask[:, :, None]  # [B, S, 1]

    params = init_params(k_par)

    out2, out1 = task_pred_forward(emb, mask, params, siamese=True)
    jax.block_until_ready((out2, out1))

    r2, r1 = ref_forward(emb, mask, params, siamese=True)
    assert out2.shape == (B, 2) and out1.shape == (B, WIDTH)
    # 5e-3 tolerance: the masked-mean uses the EUP approximate reciprocal.
    assert jnp.allclose(out2, r2, atol=5e-3, rtol=5e-3), \
        float(jnp.max(jnp.abs(out2 - r2)))
    assert jnp.allclose(out1, r1, atol=5e-3, rtol=5e-3), \
        float(jnp.max(jnp.abs(out1 - r1)))

    print("KERNEL_OK")
</pallas_src>

<mosaic_0001>
module attributes {stable_mosaic.version = 11 : i64} {
  func.func @task_pred_kernel(%arg0: memref<8x16x256xf32, #tpu.memory_space<vmem>>, %arg1: memref<1280x512xf32, #tpu.memory_space<vmem>>, %arg2: memref<1x3328xf32, #tpu.memory_space<vmem>>, %arg3: memref<8x256xf32, #tpu.memory_space<vmem>>) attributes {dimension_semantics = [], scalar_prefetch = 0 : i64, scratch_operands = 0 : i64, tpu.core_type = #tpu.core_type<tc>} {
    %c0 = arith.constant 0 : index
    %c0_0 = arith.constant 0 : index
    %c0_1 = arith.constant 0 : index
    %0 = vector.load %arg0[%c0, %c0_0, %c0_1] : memref<8x16x256xf32, #tpu.memory_space<vmem>>, vector<8x16x256xf32>
    %1 = vector.extract_strided_slice %0 {offsets = [0, 0, 0], sizes = [8, 16, 128], strides = [1, 1, 1]} : vector<8x16x256xf32> to vector<8x16x128xf32>
    %2 = vector.extract_strided_slice %0 {offsets = [0, 0, 128], sizes = [8, 16, 128], strides = [1, 1, 1]} : vector<8x16x256xf32> to vector<8x16x128xf32>
    %3 = arith.mulf %1, %2 : vector<8x16x128xf32>
    %cst = arith.constant dense<0.000000e+00> : vector<8x128xf32>
    %4 = vector.multi_reduction <add>, %3, %cst [1] : vector<8x16x128xf32> to vector<8x128xf32>
    %cst_2 = arith.constant dense<0.000000e+00> : vector<8x128xf32>
    %5 = vector.multi_reduction <add>, %2, %cst_2 [1] : vector<8x16x128xf32> to vector<8x128xf32>
    %cst_3 = arith.constant 1.000000e+00 : f32
    %6 = vector.broadcast %cst_3 : f32 to vector<8x128xf32>
    %7 = arith.maximumf %5, %6 : vector<8x128xf32>
    %8 = tpu.reciprocal %7 {approx = true} : vector<8x128xf32> -> vector<8x128xf32>
    %9 = arith.mulf %4, %8 : vector<8x128xf32>
    %c0_4 = arith.constant 0 : index
    %c0_5 = arith.constant 0 : index
    %10 = vector.load %arg1[%c0_4, %c0_5] : memref<1280x512xf32, #tpu.memory_space<vmem>>, vector<128x512xf32>
    %cst_6 = arith.constant dense<0.000000e+00> : vector<8x512xf32>
    %11 = tpu.matmul %9, %10, %cst_6 {dimension_numbers = #tpu.dot_dimension_numbers<[1], [0], [0], [1], [0, 0, 1, 1], [], []>} : vector<8x128xf32>, vector<128x512xf32>, vector<8x512xf32> -> vector<8x512xf32>
    %c0_7 = arith.constant 0 : index
    %c0_8 = arith.constant 0 : index
    %12 = vector.load %arg2[%c0_7, %c0_8] : memref<1x3328xf32, #tpu.memory_space<vmem>>, vector<1x512xf32>
    %13 = vector.broadcast %12 : vector<1x512xf32> to vector<8x512xf32>
    %14 = arith.addf %11, %13 : vector<8x512xf32>
    %c0_9 = arith.constant 0 : index
    %c512 = arith.constant 512 : index
    %15 = vector.load %arg2[%c0_9, %c512] : memref<1x3328xf32, #tpu.memory_space<vmem>>, vector<1x512xf32>
    %c0_10 = arith.constant 0 : index
    %c1024 = arith.constant 1024 : index
    %16 = vector.load %arg2[%c0_10, %c1024] : memref<1x3328xf32, #tpu.memory_space<vmem>>, vector<1x512xf32>
    %cst_11 = arith.constant dense<0.000000e+00> : vector<512xf32>
    %17 = vector.multi_reduction <add>, %14, %cst_11 [0] : vector<8x512xf32> to vector<512xf32>
    %18 = vector.shape_cast %17 : vector<512xf32> to vector<1x512xf32>
    %cst_12 = arith.constant 8.000000e+00 : f32
    %19 = vector.broadcast %cst_12 : f32 to vector<1x512xf32>
    %20 = arith.divf %18, %19 : vector<1x512xf32>
    %21 = vector.broadcast %20 : vector<1x512xf32> to vector<8x512xf32>
    %22 = arith.subf %14, %21 : vector<8x512xf32>
    %23 = arith.mulf %22, %22 : vector<8x512xf32>
    %cst_13 = arith.constant dense<0.000000e+00> : vector<512xf32>
    %24 = vector.multi_reduction <add>, %23, %cst_13 [0] : vector<8x512xf32> to vector<512xf32>
    %25 = vector.shape_cast %24 : vector<512xf32> to vector<1x512xf32>
    %cst_14 = arith.constant 8.000000e+00 : f32
    %26 = vector.broadcast %cst_14 : f32 to vector<1x512xf32>
    %27 = arith.divf %25, %26 : vector<1x512xf32>
    %28 = vector.broadcast %20 : vector<1x512xf32> to vector<8x512xf32>
    %29 = arith.subf %14, %28 : vector<8x512xf32>
    %30 = vector.broadcast %15 : vector<1x512xf32> to vector<8x512xf32>
    %31 = arith.mulf %30, %29 : vector<8x512xf32>
    %cst_15 = arith.constant 9.99999974E-6 : f32
    %32 = vector.broadcast %cst_15 : f32 to vector<1x512xf32>
    %33 = arith.addf %27, %32 : vector<1x512xf32>
    %34 = math.rsqrt %33 : vector<1x512xf32>
    %35 = vector.broadcast %34 : vector<1x512xf32> to vector<8x512xf32>
    %36 = arith.mulf %31, %35 : vector<8x512xf32>
    %37 = vector.broadcast %16 : vector<1x512xf32> to vector<8x512xf32>
    %38 = arith.addf %36, %37 : vector<8x512xf32>
    %cst_16 = arith.constant 1.702000e+00 : f32
    %39 = vector.broadcast %cst_16 : f32 to vector<8x512xf32>
    %40 = arith.mulf %39, %38 : vector<8x512xf32>
    %41 = arith.negf %40 : vector<8x512xf32>
    %42 = math.exp %41 : vector<8x512xf32>
    %cst_17 = arith.constant 1.000000e+00 : f32
    %43 = vector.broadcast %cst_17 : f32 to vector<8x512xf32>
    %44 = arith.addf %43, %42 : vector<8x512xf32>
    %45 = arith.divf %43, %44 : vector<8x512xf32>
    %46 = arith.mulf %38, %45 : vector<8x512xf32>
    %c128 = arith.constant 128 : index
    %c0_18 = arith.constant 0 : index
    %47 = vector.load %arg1[%c128, %c0_18] : memref<1280x512xf32, #tpu.memory_space<vmem>>, vector<512x128xf32>
    %cst_19 = arith.constant dense<0.000000e+00> : vector<8x128xf32>
    %48 = tpu.matmul %46, %47, %cst_19 {dimension_numbers = #tpu.dot_dimension_numbers<[1], [0], [0], [1], [0, 0, 1, 1], [], []>} : vector<8x512xf32>, vector<512x128xf32>, vector<8x128xf32> -> vector<8x128xf32>
    %c0_20 = arith.constant 0 : index
    %c1536 = arith.constant 1536 : index
    %49 = vector.load %arg2[%c0_20, %c1536] : memref<1x3328xf32, #tpu.memory_space<vmem>>, vector<1x128xf32>
    %50 = vector.broadcast %49 : vector<1x128xf32> to vector<8x128xf32>
    %51 = arith.addf %48, %50 : vector<8x128xf32>
    %52 = arith.addf %51, %9 : vector<8x128xf32>
    %c640 = arith.constant 640 : index
    %c0_21 = arith.constant 0 : index
    %53 = vector.load %arg1[%c640, %c0_21] : memref<1280x512xf32, #tpu.memory_space<vmem>>, vector<128x256xf32>
    %cst_22 = arith.constant dense<0.000000e+00> : vector<8x256xf32>
    %54 = tpu.matmul %52, %53, %cst_22 {dimension_numbers = #tpu.dot_dimension_numbers<[1], [0], [0], [1], [0, 0, 1, 1], [], []>} : vector<8x128xf32>, vector<128x256xf32>, vector<8x256xf32> -> vector<8x256xf32>
    %c0_23 = arith.constant 0 : index
    %c1664 = arith.constant 1664 : index
    %55 = vector.load %arg2[%c0_23, %c1664] : memref<1x3328xf32, #tpu.memory_space<vmem>>, vector<1x256xf32>
    %56 = vector.broadcast %55 : vector<1x256xf32> to vector<8x256xf32>
    %57 = arith.addf %54, %56 : vector<8x256xf32>
    %c0_24 = arith.constant 0 : index
    %c1920 = arith.constant 1920 : index
    %58 = vector.load %arg2[%c0_24, %c1920] : memref<1x3328xf32, #tpu.memory_space<vmem>>, vector<1x256xf32>
    %c0_25 = arith.constant 0 : index
    %c2176 = arith.constant 2176 : index
    %59 = vector.load %arg2[%c0_25, %c2176] : memref<1x3328xf32, #tpu.memory_space<vmem>>, vector<1x256xf32>
    %cst_26 = arith.constant dense<0.000000e+00> : vector<256xf32>
    %60 = vector.multi_reduction <add>, %57, %cst_26 [0] : vector<8x256xf32> to vector<256xf32>
    %61 = vector.shape_cast %60 : vector<256xf32> to vector<1x256xf32>
    %cst_27 = arith.constant 8.000000e+00 : f32
    %62 = vector.broadcast %cst_27 : f32 to vector<1x256xf32>
    %63 = arith.divf %61, %62 : vector<1x256xf32>
    %64 = vector.broadcast %63 : vector<1x256xf32> to vector<8x256xf32>
    %65 = arith.subf %57, %64 : vector<8x256xf32>
    %66 = arith.mulf %65, %65 : vector<8x256xf32>
    %cst_28 = arith.constant dense<0.000000e+00> : vector<256xf32>
    %67 = vector.multi_reduction <add>, %66, %cst_28 [0] : vector<8x256xf32> to vector<256xf32>
    %68 = vector.shape_cast %67 : vector<256xf32> to vector<1x256xf32>
    %cst_29 = arith.constant 8.000000e+00 : f32
    %69 = vector.broadcast %cst_29 : f32 to vector<1x256xf32>
    %70 = arith.divf %68, %69 : vector<1x256xf32>
    %71 = vector.broadcast %63 : vector<1x256xf32> to vector<8x256xf32>
    %72 = arith.subf %57, %71 : vector<8x256xf32>
    %73 = vector.broadcast %58 : vector<1x256xf32> to vector<8x256xf32>
    %74 = arith.mulf %73, %72 : vector<8x256xf32>
    %cst_30 = arith.constant 9.99999974E-6 : f32
    %75 = vector.broadcast %cst_30 : f32 to vector<1x256xf32>
    %76 = arith.addf %70, %75 : vector<1x256xf32>
    %77 = math.rsqrt %76 : vector<1x256xf32>
    %78 = vector.broadcast %77 : vector<1x256xf32> to vector<8x256xf32>
    %79 = arith.mulf %74, %78 : vector<8x256xf32>
    %80 = vector.broadcast %59 : vector<1x256xf32> to vector<8x256xf32>
    %81 = arith.addf %79, %80 : vector<8x256xf32>
    %cst_31 = arith.constant 1.702000e+00 : f32
    %82 = vector.broadcast %cst_31 : f32 to vector<8x256xf32>
    %83 = arith.mulf %82, %81 : vector<8x256xf32>
    %84 = arith.negf %83 : vector<8x256xf32>
    %85 = math.exp %84 : vector<8x256xf32>
    %cst_32 = arith.constant 1.000000e+00 : f32
    %86 = vector.broadcast %cst_32 : f32 to vector<8x256xf32>
    %87 = arith.addf %86, %85 : vector<8x256xf32>
    %88 = arith.divf %86, %87 : vector<8x256xf32>
    %89 = arith.mulf %81, %88 : vector<8x256xf32>
    %c768 = arith.constant 768 : index
    %c0_33 = arith.constant 0 : index
    %90 = vector.load %arg1[%c768, %c0_33] : memref<1280x512xf32, #tpu.memory_space<vmem>>, vector<256x128xf32>
    %cst_34 = arith.constant dense<0.000000e+00> : vector<8x128xf32>
    %91 = tpu.matmul %89, %90, %cst_34 {dimension_numbers = #tpu.dot_dimension_numbers<[1], [0], [0], [1], [0, 0, 1, 1], [], []>} : vector<8x256xf32>, vector<256x128xf32>, vector<8x128xf32> -> vector<8x128xf32>
    %c0_35 = arith.constant 0 : index
    %c2432 = arith.constant 2432 : index
    %92 = vector.load %arg2[%c0_35, %c2432] : memref<1x3328xf32, #tpu.memory_space<vmem>>, vector<1x128xf32>
    %93 = vector.broadcast %92 : vector<1x128xf32> to vector<8x128xf32>
    %94 = arith.addf %91, %93 : vector<8x128xf32>
    %c0_36 = arith.constant 0 : index
    %c2560 = arith.constant 2560 : index
    %95 = vector.load %arg2[%c0_36, %c2560] : memref<1x3328xf32, #tpu.memory_space<vmem>>, vector<1x128xf32>
    %c0_37 = arith.constant 0 : index
    %c2688 = arith.constant 2688 : index
    %96 = vector.load %arg2[%c0_37, %c2688] : memref<1x3328xf32, #tpu.memory_space<vmem>>, vector<1x128xf32>
    %cst_38 = arith.constant dense<0.000000e+00> : vector<128xf32>
    %97 = vector.multi_reduction <add>, %94, %cst_38 [0] : vector<8x128xf32> to vector<128xf32>
    %98 = vector.shape_cast %97 : vector<128xf32> to vector<1x128xf32>
    %cst_39 = arith.constant 8.000000e+00 : f32
    %99 = vector.broadcast %cst_39 : f32 to vector<1x128xf32>
    %100 = arith.divf %98, %99 : vector<1x128xf32>
    %101 = vector.broadcast %100 : vector<1x128xf32> to vector<8x128xf32>
    %102 = arith.subf %94, %101 : vector<8x128xf32>
    %103 = arith.mulf %102, %102 : vector<8x128xf32>
    %cst_40 = arith.constant dense<0.000000e+00> : vector<128xf32>
    %104 = vector.multi_reduction <add>, %103, %cst_40 [0] : vector<8x128xf32> to vector<128xf32>
    %105 = vector.shape_cast %104 : vector<128xf32> to vector<1x128xf32>
    %cst_41 = arith.constant 8.000000e+00 : f32
    %106 = vector.broadcast %cst_41 : f32 to vector<1x128xf32>
    %107 = arith.divf %105, %106 : vector<1x128xf32>
    %108 = vector.broadcast %100 : vector<1x128xf32> to vector<8x128xf32>
    %109 = arith.subf %94, %108 : vector<8x128xf32>
    %110 = vector.broadcast %95 : vector<1x128xf32> to vector<8x128xf32>
    %111 = arith.mulf %110, %109 : vector<8x128xf32>
    %cst_42 = arith.constant 9.99999974E-6 : f32
    %112 = vector.broadcast %cst_42 : f32 to vector<1x128xf32>
    %113 = arith.addf %107, %112 : vector<1x128xf32>
    %114 = math.rsqrt %113 : vector<1x128xf32>
    %115 = vector.broadcast %114 : vector<1x128xf32> to vector<8x128xf32>
    %116 = arith.mulf %111, %115 : vector<8x128xf32>
    %117 = vector.broadcast %96 : vector<1x128xf32> to vector<8x128xf32>
    %118 = arith.addf %116, %117 : vector<8x128xf32>
    %cst_43 = arith.constant 1.702000e+00 : f32
    %119 = vector.broadcast %cst_43 : f32 to vector<8x128xf32>
    %120 = arith.mulf %119, %118 : vector<8x128xf32>
    %121 = arith.negf %120 : vector<8x128xf32>
    %122 = math.exp %121 : vector<8x128xf32>
    %cst_44 = arith.constant 1.000000e+00 : f32
    %123 = vector.broadcast %cst_44 : f32 to vector<8x128xf32>
    %124 = arith.addf %123, %122 : vector<8x128xf32>
    %125 = arith.divf %123, %124 : vector<8x128xf32>
    %126 = arith.mulf %118, %125 : vector<8x128xf32>
    %c1024_45 = arith.constant 1024 : index
    %c0_46 = arith.constant 0 : index
    %127 = vector.load %arg1[%c1024_45, %c0_46] : memref<1280x512xf32, #tpu.memory_space<vmem>>, vector<128x128xf32>
    %cst_47 = arith.constant dense<0.000000e+00> : vector<8x128xf32>
    %128 = tpu.matmul %126, %127, %cst_47 {dimension_numbers = #tpu.dot_dimension_numbers<[1], [0], [0], [1], [0, 0, 1, 1], [], []>} : vector<8x128xf32>, vector<128x128xf32>, vector<8x128xf32> -> vector<8x128xf32>
    %c0_48 = arith.constant 0 : index
    %c2816 = arith.constant 2816 : index
    %129 = vector.load %arg2[%c0_48, %c2816] : memref<1x3328xf32, #tpu.memory_space<vmem>>, vector<1x128xf32>
    %130 = vector.broadcast %129 : vector<1x128xf32> to vector<8x128xf32>
    %131 = arith.addf %128, %130 : vector<8x128xf32>
    %c0_49 = arith.constant 0 : index
    %c2944 = arith.constant 2944 : index
    %132 = vector.load %arg2[%c0_49, %c2944] : memref<1x3328xf32, #tpu.memory_space<vmem>>, vector<1x128xf32>
    %c0_50 = arith.constant 0 : index
    %c3072 = arith.constant 3072 : index
    %133 = vector.load %arg2[%c0_50, %c3072] : memref<1x3328xf32, #tpu.memory_space<vmem>>, vector<1x128xf32>
    %cst_51 = arith.constant dense<0.000000e+00> : vector<128xf32>
    %134 = vector.multi_reduction <add>, %131, %cst_51 [0] : vector<8x128xf32> to vector<128xf32>
    %135 = vector.shape_cast %134 : vector<128xf32> to vector<1x128xf32>
    %cst_52 = arith.constant 8.000000e+00 : f32
    %136 = vector.broadcast %cst_52 : f32 to vector<1x128xf32>
    %137 = arith.divf %135, %136 : vector<1x128xf32>
    %138 = vector.broadcast %137 : vector<1x128xf32> to vector<8x128xf32>
    %139 = arith.subf %131, %138 : vector<8x128xf32>
    %140 = arith.mulf %139, %139 : vector<8x128xf32>
    %cst_53 = arith.constant dense<0.000000e+00> : vector<128xf32>
    %141 = vector.multi_reduction <add>, %140, %cst_53 [0] : vector<8x128xf32> to vector<128xf32>
    %142 = vector.shape_cast %141 : vector<128xf32> to vector<1x128xf32>
    %cst_54 = arith.constant 8.000000e+00 : f32
    %143 = vector.broadcast %cst_54 : f32 to vector<1x128xf32>
    %144 = arith.divf %142, %143 : vector<1x128xf32>
    %145 = vector.broadcast %137 : vector<1x128xf32> to vector<8x128xf32>
    %146 = arith.subf %131, %145 : vector<8x128xf32>
    %147 = vector.broadcast %132 : vector<1x128xf32> to vector<8x128xf32>
    %148 = arith.mulf %147, %146 : vector<8x128xf32>
    %cst_55 = arith.constant 9.99999974E-6 : f32
    %149 = vector.broadcast %cst_55 : f32 to vector<1x128xf32>
    %150 = arith.addf %144, %149 : vector<1x128xf32>
    %151 = math.rsqrt %150 : vector<1x128xf32>
    %152 = vector.broadcast %151 : vector<1x128xf32> to vector<8x128xf32>
    %153 = arith.mulf %148, %152 : vector<8x128xf32>
    %154 = vector.broadcast %133 : vector<1x128xf32> to vector<8x128xf32>
    %155 = arith.addf %153, %154 : vector<8x128xf32>
    %cst_56 = arith.constant 1.702000e+00 : f32
    %156 = vector.broadcast %cst_56 : f32 to vector<8x128xf32>
    %157 = arith.mulf %156, %155 : vector<8x128xf32>
    %158 = arith.negf %157 : vector<8x128xf32>
    %159 = math.exp %158 : vector<8x128xf32>
    %cst_57 = arith.constant 1.000000e+00 : f32
    %160 = vector.broadcast %cst_57 : f32 to vector<8x128xf32>
    %161 = arith.addf %160, %159 : vector<8x128xf32>
    %162 = arith.divf %160, %161 : vector<8x128xf32>
    %163 = arith.mulf %155, %162 : vector<8x128xf32>
    %c1152 = arith.constant 1152 : index
    %c0_58 = arith.constant 0 : index
    %164 = vector.load %arg1[%c1152, %c0_58] : memref<1280x512xf32, #tpu.memory_space<vmem>>, vector<128x128xf32>
    %cst_59 = arith.constant dense<0.000000e+00> : vector<8x128xf32>
    %165 = tpu.matmul %163, %164, %cst_59 {dimension_numbers = #tpu.dot_dimension_numbers<[1], [0], [0], [1], [0, 0, 1, 1], [], []>} : vector<8x128xf32>, vector<128x128xf32>, vector<8x128xf32> -> vector<8x128xf32>
    %c0_60 = arith.constant 0 : index
    %c3200 = arith.constant 3200 : index
    %166 = vector.load %arg2[%c0_60, %c3200] : memref<1x3328xf32, #tpu.memory_space<vmem>>, vector<1x128xf32>
    %167 = vector.broadcast %166 : vector<1x128xf32> to vector<8x128xf32>
    %168 = arith.addf %165, %167 : vector<8x128xf32>
    %169 = tpu.concatenate %52, %168 in 1 : vector<8x128xf32>, vector<8x128xf32> -> vector<8x256xf32>
    %c0_61 = arith.constant 0 : index
    %c0_62 = arith.constant 0 : index
    %170 = vector.load %arg3[%c0_61, %c0_62] : memref<8x256xf32, #tpu.memory_space<vmem>>, vector<8x256xf32>
    tpu.vector_store %arg3[%c0_61, %c0_62], %169 {strides = array<i32>} : memref<8x256xf32, #tpu.memory_space<vmem>>, vector<8x256xf32>,
    return
  }
}

</mosaic_0001>

<bundles_post_ra>
// kernel: tpu_custom_call.1
= control target key start
LH: loop header
LB: loop body
LE: loop exit
PB: predicated region body
PF: predicated region fallthrough
CT: control target
= control target key end

     0   :  { %8 = vsyncpa [#allocation3], 0  ;;  %s1987_s0 = inlined_call_operand.hbm [shape: f32[8,16,256], index: 0, kind: input, shape index: {}]   ;;  %s1988_s1 = inlined_call_operand.hbm [shape: f32[1280,512], index: 1, kind: input, shape index: {}]   ;;  %s1989_s2 = inlined_call_operand.hbm [shape: f32[1,3328], index: 2, kind: input, shape index: {}]   ;;  %s1990_s3 = inlined_call_operand.hbm [shape: f32[8,256], index: 3, kind: output, shape index: {}]  }
   0x1   :  { %9 = vsyncpa [#allocation6], 0 }
   0x2   :  { %10 = vsyncpa [#allocation4], 0  ;;  %s1843_s12 = smov [#allocation5]  }
   0x3   :  { %s28_s13 = sshll.u32 %s1843_s12, 4  ;;  %s29_s13 = int_to_ptr.vmem [resolvable:$true] %s28_s13 }
   0x4   :  { %s1765_s14 = scalar_lea.vmem %s29_s13, 81920  ;;  %p1770_p1 = scmp.lt.s32.totalorder %s29_s13, %s29_s13 }
   0x5   :  { %p1766_p0 = scmp.ne.s32.totalorder %s29_s13, %s1765_s14  ;;  %p1771_p2 = scmp.lt.s32.totalorder %s1765_s14, %s1765_s14 }
   0x7   :  { %p1772_p3 = por %p1771_p2, %p1770_p1 }
   0x9   :  { %p1773_p4 = pnand %p1772_p3, %p1766_p0 }
   0xb   :  { %1776 = shalt.err (!%p1773_p4)
}
   0xc   :  { %s1844_s15 = smov 512   ;;  %s1845_s16 = smov 32  }
   0xd   :  { %34 = dma.hbm_to_vmem [thread:$0]  %s1988_s1, 81920, %s29_s13, [#allocation6], %s1844_s15, %s1844_s15, %s1845_s16  }
   0xe   :  { %s1846_s19 = smov [#allocation2]  }
   0xf   :  { %s16_s20 = sshll.u32 %s1846_s19, 4  ;;  %s17_s20 = int_to_ptr.vmem [resolvable:$true] %s16_s20 }
  0x10   :  { %s1785_s21 = scalar_lea.vmem %s17_s20, 4096  ;;  %p1790_p6 = scmp.lt.s32.totalorder %s17_s20, %s17_s20 }
  0x11   :  { %p1786_p5 = scmp.ne.s32.totalorder %s17_s20, %s1785_s21  ;;  %p1791_p7 = scmp.lt.s32.totalorder %s1785_s21, %s1785_s21 }
  0x13   :  { %p1792_p8 = por %p1791_p7, %p1790_p6 }
  0x15   :  { %p1793_p9 = pnand %p1792_p8, %p1786_p5 }
  0x17   :  { %1796 = shalt.err (!%p1793_p9)
}
  0x18   :  { %s1847_s22 = smov 256   ;;  %s1848_s23 = smov 16  }
  0x19   :  { %22 = dma.hbm_to_vmem [thread:$0]  %s1987_s0, 4096, %s17_s20, [#allocation3], %s1847_s22, %s1847_s22, %s1848_s23  }
  0x1a   :  { %s1849_s26 = smov [#allocation7]  }
  0x1b   :  { %s41_s27 = sshll.u32 %s1849_s26, 4  ;;  %s42_s27 = int_to_ptr.vmem [resolvable:$true] %s41_s27 }
  0x1c   :  { %s1805_s1 = scalar_lea.vmem %s42_s27, 416  ;;  %p1810_p11 = scmp.lt.s32.totalorder %s42_s27, %s42_s27 }
  0x1d   :  { %p1806_p10 = scmp.ne.s32.totalorder %s42_s27, %s1805_s1  ;;  %p1811_p12 = scmp.lt.s32.totalorder %s1805_s1, %s1805_s1 }
  0x1f   :  { %p1812_p13 = por %p1811_p12, %p1810_p11 }
  0x21   :  { %p1813_p0 = pnand %p1812_p13, %p1806_p10 }
  0x23   :  { %1816 = shalt.err (!%p1813_p0)
}
  0x24   :  { %44 = dma.hbm_to_vmem [thread:$0]  %s1989_s2, 416, %s42_s27, [#allocation6]  }
  0x25   :  { %1837 = dma.done.wait [#allocation3], 4096  }
  0x26   :  { %1838 = vsyncadd [#allocation3], 4294963200 }
  0x27   :  { %1839 = dma.done.wait [#allocation6], 82336  }
  0x28   :  { %1840 = vsyncadd [#allocation6], 4294884960  ;;  %v1850_v0 = vmov 0.0   ;;  %v299_v1 = vld [vmem:[#allocation5 + $0x1e8] sm:$0xff]  ;;  %v301_v2 = vld [vmem:[#allocation5 + $0x1f8] sm:$0xff]  ;;  %vm332_vm0 = vcmask 1041409  }
  0x29   :  { %411 = vmatprep.mubr.f32.mxu0 %v1850_v0  ;;  %482 = vmatprep.mubr.f32.mxu1 %v1850_v0  ;;  %v298_v3 = vld [vmem:[#allocation5 + $0x1e0] sm:$0xff]  ;;  %v300_v4 = vld [vmem:[#allocation5 + $0x1f0] sm:$0xff]  ;;  %v295_v5 = vld [vmem:[#allocation5 + $0x1c8] sm:$0xff]  ;;  %vm334_vm1 = vcmask 1042434   ;;  %vm336_vm2 = vcmask 1043459   ;;  %vm338_vm3 = vcmask 1044484  }
  0x2a   :  { %347 = vmatprep.subr.mxu0 %v299_v1  ;;  %418 = vmatprep.subr.mxu1 %v301_v2  ;;  %v297_v6 = vld [vmem:[#allocation5 + $0x1d8] sm:$0xff]  ;;  %v294_v7 = vld [vmem:[#allocation5 + $0x1c0] sm:$0xff]  ;;  %v296_v8 = vld [vmem:[#allocation5 + $0x1d0] sm:$0xff]  ;;  %vm340_vm4 = vcmask 1045509   ;;  %vm342_vm5 = vcmask 1046534   ;;  %vm344_vm6 = vcmask 1047559  }
  0x2b   :  { %348 = vmatpush1.msra.mxu0 %v298_v3  ;;  %419 = vmatpush1.msra.mxu1 %v300_v4  ;;  %v291_v9 = vld [vmem:[#allocation5 + $0x1a8] sm:$0xff]  ;;  %v293_v10 = vld [vmem:[#allocation5 + $0x1b8] sm:$0xff]  ;;  %v290_v11 = vld [vmem:[#allocation5 + $0x1a0] sm:$0xff]  ;;  %vm1851_vm7 = vmmov 0   ;;  %s1852_s0 = smov [#allocation8]  }
  0x2c   :  { %349 = vmatprep.subr.mxu0 %v295_v5  ;;  %420 = vmatprep.subr.mxu1 %v297_v6  ;;  %v292_v12 = vld [vmem:[#allocation5 + $0x1b0] sm:$0xff]  ;;  %v287_v13 = vld [vmem:[#allocation5 + $0x188] sm:$0xff]  ;;  %v289_v14 = vld [vmem:[#allocation5 + $0x198] sm:$0xff]  ;;  %s1448_s2 = sshll.u32 %s1852_s0, 4  ;;  %s1449_s2 = int_to_ptr.vmem [resolvable:$true] %s1448_s2 }
  0x2d   :  { %350 = vmatpush1.msra.mxu0 %v294_v7  ;;  %421 = vmatpush1.msra.mxu1 %v296_v8  ;;  %v286_v15 = vld [vmem:[#allocation5 + $0x180] sm:$0xff]  ;;  %v288_v16 = vld [vmem:[#allocation5 + $0x190] sm:$0xff]  ;;  %v283_v17 = vld [vmem:[#allocation5 + $0x168] sm:$0xff]  ;;  %s1817_s30 = scalar_lea.vmem %s1449_s2, 256  ;;  %p1822_p2 = scmp.lt.s32.totalorder %s1449_s2, %s1449_s2 }
  0x2e   :  { %351 = vmatprep.subr.mxu0 %v291_v9  ;;  %422 = vmatprep.subr.mxu1 %v293_v10  ;;  %v285_v18 = vld [vmem:[#allocation5 + $0x178] sm:$0xff]  ;;  %v282_v19 = vld [vmem:[#allocation5 + $0x160] sm:$0xff]  ;;  %v284_v20 = vld [vmem:[#allocation5 + $0x170] sm:$0xff]  ;;  %p1818_p1 = scmp.ne.s32.totalorder %s1449_s2, %s1817_s30  ;;  %p1823_p3 = scmp.lt.s32.totalorder %s1817_s30, %s1817_s30 }
  0x2f   :  { %352 = vmatpush1.msra.mxu0 %v290_v11  ;;  %423 = vmatpush1.msra.mxu1 %v292_v12  ;;  %v279_v21 = vld [vmem:[#allocation5 + $0x148] sm:$0xff]  ;;  %v281_v22 = vld [vmem:[#allocation5 + $0x158] sm:$0xff]  ;;  %v278_v23 = vld [vmem:[#allocation5 + $0x140] sm:$0xff] }
  0x30   :  { %353 = vmatprep.subr.mxu0 %v287_v13  ;;  %424 = vmatprep.subr.mxu1 %v289_v14  ;;  %v280_v24 = vld [vmem:[#allocation5 + $0x150] sm:$0xff]  ;;  %v275_v25 = vld [vmem:[#allocation5 + $0x128] sm:$0xff]  ;;  %v277_v26 = vld [vmem:[#allocation5 + $0x138] sm:$0xff]  ;;  %p1824_p4 = por %p1823_p3, %p1822_p2 }
  0x31   :  { %354 = vmatpush1.msra.mxu0 %v286_v15  ;;  %425 = vmatpush1.msra.mxu1 %v288_v16  ;;  %v274_v27 = vld [vmem:[#allocation5 + $0x120] sm:$0xff]  ;;  %v276_v28 = vld [vmem:[#allocation5 + $0x130] sm:$0xff]  ;;  %v271_v29 = vld [vmem:[#allocation5 + $0x108] sm:$0xff] }
  0x32   :  { %355 = vmatprep.subr.mxu0 %v283_v17  ;;  %426 = vmatprep.subr.mxu1 %v285_v18  ;;  %v273_v30 = vld [vmem:[#allocation5 + $0x118] sm:$0xff]  ;;  %v270_v31 = vld [vmem:[#allocation5 + $0x100] sm:$0xff]  ;;  %v272_v32 = vld [vmem:[#allocation5 + $0x110] sm:$0xff]  ;;  %p1825_p5 = pnand %p1824_p4, %p1818_p1 }
  0x33   :  { %356 = vmatpush1.msra.mxu0 %v282_v19  ;;  %427 = vmatpush1.msra.mxu1 %v284_v20  ;;  %v267_v33 = vld [vmem:[#allocation5 + $0xe8] sm:$0xff]  ;;  %v269_v34 = vld [vmem:[#allocation5 + $0xf8] sm:$0xff]  ;;  %v266_v35 = vld [vmem:[#allocation5 + $0xe0] sm:$0xff] }
  0x34   :  { %357 = vmatprep.subr.mxu0 %v279_v21  ;;  %428 = vmatprep.subr.mxu1 %v281_v22  ;;  %v268_v36 = vld [vmem:[#allocation5 + $0xf0] sm:$0xff]  ;;  %v263_v37 = vld [vmem:[#allocation5 + $0xc8] sm:$0xff]  ;;  %v265_v38 = vld [vmem:[#allocation5 + $0xd8] sm:$0xff] }
  0x35   :  { %358 = vmatpush1.msra.mxu0 %v278_v23  ;;  %429 = vmatpush1.msra.mxu1 %v280_v24  ;;  %v262_v39 = vld [vmem:[#allocation5 + $0xc0] sm:$0xff]  ;;  %v264_v40 = vld [vmem:[#allocation5 + $0xd0] sm:$0xff]  ;;  %v259_v41 = vld [vmem:[#allocation5 + $0xa8] sm:$0xff] }
  0x36   :  { %359 = vmatprep.subr.mxu0 %v275_v25  ;;  %430 = vmatprep.subr.mxu1 %v277_v26  ;;  %v261_v42 = vld [vmem:[#allocation5 + $0xb8] sm:$0xff]  ;;  %v258_v43 = vld [vmem:[#allocation5 + $0xa0] sm:$0xff]  ;;  %v260_v44 = vld [vmem:[#allocation5 + $0xb0] sm:$0xff] }
  0x37   :  { %360 = vmatpush1.msra.mxu0 %v274_v27  ;;  %431 = vmatpush1.msra.mxu1 %v276_v28  ;;  %v255_v45 = vld [vmem:[#allocation5 + $0x88] sm:$0xff]  ;;  %v257_v46 = vld [vmem:[#allocation5 + $0x98] sm:$0xff]  ;;  %v254_v47 = vld [vmem:[#allocation5 + $0x80] sm:$0xff] }
  0x38   :  { %361 = vmatprep.subr.mxu0 %v271_v29  ;;  %432 = vmatprep.subr.mxu1 %v273_v30  ;;  %v256_v48 = vld [vmem:[#allocation5 + $0x90] sm:$0xff]  ;;  %v251_v49 = vld [vmem:[#allocation5 + $0x68] sm:$0xff]  ;;  %v253_v50 = vld [vmem:[#allocation5 + $0x78] sm:$0xff] }
  0x39   :  { %362 = vmatpush1.msra.mxu0 %v270_v31  ;;  %433 = vmatpush1.msra.mxu1 %v272_v32  ;;  %v250_v51 = vld [vmem:[#allocation5 + $0x60] sm:$0xff]  ;;  %v252_v52 = vld [vmem:[#allocation5 + $0x70] sm:$0xff]  ;;  %v55_v54 = vld [vmem:[#allocation2 + $0x8] sm:$0xff] }
  0x3a   :  { %363 = vmatprep.subr.mxu0 %v267_v33  ;;  %434 = vmatprep.subr.mxu1 %v269_v34  ;;  %v54_v53 = vld [vmem:[#allocation2] sm:$0xff]  ;;  %v247_v55 = vld [vmem:[#allocation5 + $0x48] sm:$0xff]  ;;  %v249_v56 = vld [vmem:[#allocation5 + $0x58] sm:$0xff] }
  0x3b   :  { %364 = vmatpush1.msra.mxu0 %v266_v35  ;;  %435 = vmatpush1.msra.mxu1 %v268_v36  ;;  %v56_v57 = vld [vmem:[#allocation2 + $0x10] sm:$0xff]  ;;  %v57_v58 = vld [vmem:[#allocation2 + $0x18] sm:$0xff]  ;;  %v58_v59 = vld [vmem:[#allocation2 + $0x20] sm:$0xff]  ;;  %v86_v60 = vmul.f32 %v55_v54, %v54_v53 }
  0x3c   :  { %365 = vmatprep.subr.mxu0 %v263_v37  ;;  %436 = vmatprep.subr.mxu1 %v265_v38  ;;  %v246_v61 = vld [vmem:[#allocation5 + $0x40] sm:$0xff]  ;;  %v59_v62 = vld [vmem:[#allocation2 + $0x28] sm:$0xff]  ;;  %v60_v63 = vld [vmem:[#allocation2 + $0x30] sm:$0xff]  ;;  %v87_v2 = vmul.f32 %v57_v58, %v56_v57  ;;  %v158_v3 = vadd.f32 %v57_v58, %v55_v54 }
  0x3d   :  { %366 = vmatpush1.msra.mxu0 %v262_v39  ;;  %437 = vmatpush1.msra.mxu1 %v264_v40  ;;  %v61_v1 = vld [vmem:[#allocation2 + $0x38] sm:$0xff]  ;;  %v248_v4 = vld [vmem:[#allocation5 + $0x50] sm:$0xff]  ;;  %v62_v5 = vld [vmem:[#allocation2 + $0x40] sm:$0xff]  ;;  %v88_v7 = vmul.f32 %v59_v62, %v58_v59 }
  0x3e   :  { %367 = vmatprep.subr.mxu0 %v259_v41  ;;  %438 = vmatprep.subr.mxu1 %v261_v42  ;;  %v64_v6 = vld [vmem:[#allocation2 + $0x50] sm:$0xff]  ;;  %v89_v8 = vmul.f32 %v61_v1, %v60_v63  ;;  %v243_v9 = vld [vmem:[#allocation5 + $0x28] sm:$0xff]  ;;  %v245_v10 = vld [vmem:[#allocation5 + $0x38] sm:$0xff]  ;;  %v102_v12 = vadd.f32 %v87_v2, %v86_v60  ;;  %v159_v22 = vrot.slane %v158_v3, 4  ;;  %v165_v39 = vadd.f32 %v61_v1, %v59_v62 }
  0x3f   :  { %368 = vmatpush1.msra.mxu0 %v258_v43  ;;  %439 = vmatpush1.msra.mxu1 %v260_v44  ;;  %v1884_v11 = vld [vmem:[#allocation2 + $0x48] sm:$0xff]  ;;  %v65_v13 = vld [vmem:[#allocation2 + $0x58] sm:$0xff]  ;;  %v66_v14 = vld [vmem:[#allocation2 + $0x60] sm:$0xff] }
  0x40   :  { %369 = vmatprep.subr.mxu0 %v255_v45  ;;  %440 = vmatprep.subr.mxu1 %v257_v46  ;;  %v68_v15 = vld [vmem:[#allocation2 + $0x70] sm:$0xff]  ;;  %v109_v16 = vadd.f32 %v89_v8, %v88_v7  ;;  %v242_v17 = vld [vmem:[#allocation5 + $0x20] sm:$0xff]  ;;  %v239_v19 = vld [vmem:[#allocation5 + $0x8] sm:$0xff]  ;;  %v90_v20 = vmul.f32 %v1884_v11, %v62_v5  ;;  %v91_v21 = vmul.f32 %v65_v13, %v64_v6  ;;  %v103_v26 = vrot.slane %v102_v12, 4 }
  0x41   :  { %370 = vmatpush1.msra.mxu0 %v254_v47  ;;  %441 = vmatpush1.msra.mxu1 %v256_v48  ;;  %v244_v18 = vld [vmem:[#allocation5 + $0x30] sm:$0xff]  ;;  %v241_v23 = vld [vmem:[#allocation5 + $0x18] sm:$0xff]  ;;  %v1887_v24 = vld [vmem:[#allocation2 + $0x68] sm:$0xff]  ;;  %v160_v35 = vadd.f32 %v159_v22, %v158_v3  ;;  %v166_v54 = vrot.slane %v165_v39, 4 }
  0x42   :  { %371 = vmatprep.subr.mxu0 %v251_v49  ;;  %442 = vmatprep.subr.mxu1 %v253_v50  ;;  %v1889_v25 = vld [vmem:[#allocation2 + $0x78] sm:$0xff]  ;;  %v238_v27 = vld [vmem:[#allocation5] sm:$0xff]  ;;  %v240_v28 = vld [vmem:[#allocation5 + $0x10] sm:$0xff]  ;;  %v92_v29 = vmul.f32 %v1887_v24, %v66_v14  ;;  %v110_v33 = vrot.slane %v109_v16, 4  ;;  %v116_v34 = vadd.f32 %v91_v21, %v90_v20  ;;  %v104_v38 = vadd.f32 %v103_v26, %v102_v12 }
  0x43   :  { %372 = vmatpush1.msra.mxu0 %v250_v51  ;;  %443 = vmatpush1.msra.mxu1 %v252_v52  ;;  %v93_v30 = vmul.f32 %v1889_v25, %v68_v15  ;;  %v70_v31 = vld [vmem:[#allocation2 + $0x80] sm:$0xff]  ;;  %v72_v32 = vld [vmem:[#allocation2 + $0x90] sm:$0xff]  ;;  %v71_v36 = vld [vmem:[#allocation2 + $0x88] sm:$0xff]  ;;  %v161_v49 = vrot.slane %v160_v35, 2  ;;  %v179_v21 = vadd.f32 %v1889_v25, %v1887_v24 }
  0x44   :  { %373 = vmatprep.subr.mxu0 %v247_v55  ;;  %444 = vmatprep.subr.mxu1 %v249_v56  ;;  %v73_v37 = vld [vmem:[#allocation2 + $0x98] sm:$0xff]  ;;  %v94_v40 = vmul.f32 %v71_v36, %v70_v31  ;;  %v74_v43 = vld [vmem:[#allocation2 + $0xa0] sm:$0xff]  ;;  %v111_v44 = vadd.f32 %v110_v33, %v109_v16  ;;  %v76_v45 = vld [vmem:[#allocation2 + $0xb0] sm:$0xff]  ;;  %v117_v48 = vrot.slane %v116_v34, 4  ;;  %v105_v53 = vrot.slane %v104_v38, 2 }
  0x45   :  { %374 = vmatpush1.msra.mxu0 %v246_v61  ;;  %445 = vmatpush1.msra.mxu1 %v248_v4  ;;  %v95_v41 = vmul.f32 %v73_v37, %v72_v32  ;;  %v123_v42 = vadd.f32 %v93_v30, %v92_v29  ;;  %v78_v46 = vld [vmem:[#allocation2 + $0xc0] sm:$0xff]  ;;  %v80_v47 = vld [vmem:[#allocation2 + $0xd0] sm:$0xff]  ;;  %v75_v50 = vld [vmem:[#allocation2 + $0xa8] sm:$0xff]  ;;  %v172_v61 = vadd.f32 %v65_v13, %v1884_v11  ;;  %v180_v29 = vrot.slane %v179_v21, 4 }
  0x46   :  { %375 = vmatprep.subr.mxu0 %v243_v9  ;;  %446 = vmatprep.subr.mxu1 %v245_v10  ;;  %v82_v51 = vld [vmem:[#allocation2 + $0xe0] sm:$0xff]  ;;  %v84_v52 = vld [vmem:[#allocation2 + $0xf0] sm:$0xff]  ;;  %v77_v55 = vld [vmem:[#allocation2 + $0xb8] sm:$0xff]  ;;  %v96_v58 = vmul.f32 %v75_v50, %v74_v43  ;;  %v112_v4 = vrot.slane %v111_v44, 2  ;;  %v1894_v7 = vadd.f32 %v117_v48, %v116_v34  ;;  %v162_v8 = vadd.f32 %v161_v49, %v160_v35 }
  0x47   :  { %376 = vmatpush1.msra.mxu0 %v242_v17  ;;  %447 = vmatpush1.msra.mxu1 %v244_v18  ;;  %v79_v56 = vld [vmem:[#allocation2 + $0xc8] sm:$0xff]  ;;  %v81_v57 = vld [vmem:[#allocation2 + $0xd8] sm:$0xff]  ;;  %v124_v59 = vrot.slane %v123_v42, 4  ;;  %v130_v60 = vadd.f32 %v95_v41, %v94_v40  ;;  %v97_v1 = vmul.f32 %v77_v55, %v76_v45  ;;  %v1896_v9 = vadd.f32 %v105_v53, %v104_v38 }
  0x48   :  { %377 = vmatprep.subr.mxu0 %v239_v19  ;;  %448 = vmatprep.subr.mxu1 %v241_v23  ;;  %v83_v62 = vld [vmem:[#allocation2 + $0xe8] sm:$0xff]  ;;  %v85_v63 = vld [vmem:[#allocation2 + $0xf8] sm:$0xff]  ;;  %v98_v2 = vmul.f32 %v79_v56, %v78_v46  ;;  %v99_v3 = vmul.f32 %v81_v57, %v80_v47  ;;  %v167_v10 = vadd.f32 %v166_v54, %v165_v39  ;;  %v163_v15 = vrot.slane %v162_v8, 1 }
  0x49   :  { %378 = vmatpush1.msra.mxu0 %v238_v27  ;;  %449 = vmatpush1.msra.mxu1 %v240_v28  ;;  %v100_v5 = vmul.f32 %v83_v62, %v82_v51  ;;  %v101_v6 = vmul.f32 %v85_v63, %v84_v52  ;;  %v1898_v12 = vadd.f32 %v124_v59, %v123_v42  ;;  %v131_v14 = vrot.slane %v130_v60, 4 }
  0x4a   :  { %v1900_v16 = vadd.f32 %v112_v4, %v111_v44  ;;  %v137_v11 = vadd.f32 %v97_v1, %v96_v58  ;;  %v168_v13 = vrot.slane %v167_v10, 2  ;;  %v173_v17 = vrot.slane %v172_v61, 4 }
  0x4b   :  { %v119_v18 = vrot.slane %v1894_v7, 2  ;;  %v144_v19 = vadd.f32 %v99_v3, %v98_v2  ;;  %v151_v20 = vadd.f32 %v101_v6, %v100_v5  ;;  %v107_v22 = vrot.slane %v1896_v9, 1 }
  0x4c   :  { %v164_v23 = vadd.f32 %v163_v15, %v162_v8  ;;  %v169_v26 = vadd.f32 %v168_v13, %v167_v10  ;;  %v174_v27 = vadd.f32 %v173_v17, %v172_v61  ;;  %v126_v28 = vrot.slane %v1898_v12, 2 }
  0x4d   :  { %v186_v30 = vadd.f32 %v73_v37, %v71_v36  ;;  %v193_v31 = vadd.f32 %v77_v55, %v75_v50  ;;  %v1907_v32 = vadd.f32 %v131_v14, %v130_v60  ;;  %v138_v33 = vrot.slane %v137_v11, 4 }
  0x4e   :  { %v170_v34 = vrot.slane %v169_v26, 1  ;;  %v175_v35 = vrot.slane %v174_v27, 2  ;;  %v181_v38 = vadd.f32 %v180_v29, %v179_v21  ;;  %v200_v41 = vadd.f32 %v81_v57, %v79_v56 }
  0x4f   :  { %v187_v39 = vrot.slane %v186_v30, 4  ;;  %v194_v40 = vrot.slane %v193_v31, 4  ;;  %v207_v42 = vadd.f32 %v85_v63, %v83_v62  ;;  %v214_v43 = vmax.f32 %v164_v23, 1.0 }
  0x50   :  { %v171_v24 = vadd.f32 %v170_v34, %v169_v26  ;;  %v176_v25 = vadd.f32 %v175_v35, %v174_v27  ;;  %v182_v44 = vrot.slane %v181_v38, 2  ;;  %v201_v47 = vrot.slane %v200_v41, 4 }
  0x51   :  { %v188_v45 = vadd.f32 %v187_v39, %v186_v30  ;;  %v195_v46 = vadd.f32 %v194_v40, %v193_v31  ;;  %v208_v36 = vrot.slane %v207_v42, 4  ;;  %1693 = vrcp.f32 %v214_v43 }
  0x52   :  { %v177_v48 = vrot.slane %v176_v25, 1  ;;  %v215_v37 = vmax.f32 %v171_v24, 1.0  ;;  %v183_v49 = vadd.f32 %v182_v44, %v181_v38  ;;  %v202_v52 = vadd.f32 %v201_v47, %v200_v41 }
  0x53   :  { %v189_v50 = vrot.slane %v188_v45, 2  ;;  %v196_v51 = vrot.slane %v195_v46, 2  ;;  %v145_v53 = vrot.slane %v144_v19, 4  ;;  %v209_v55 = vadd.f32 %v208_v36, %v207_v42 }
  0x54   :  { %v178_v54 = vadd.f32 %v177_v48, %v176_v25  ;;  %1695 = vrcp.f32 %v215_v37  ;;  %v184_v56 = vrot.slane %v183_v49, 1  ;;  %v203_v59 = vrot.slane %v202_v52, 2 }
  0x55   :  { %v190_v57 = vadd.f32 %v189_v50, %v188_v45  ;;  %v197_v58 = vadd.f32 %v196_v51, %v195_v46  ;;  %v114_v60 = vrot.slane %v1900_v16, 1  ;;  %v152_v61 = vrot.slane %v151_v20, 4 }
  0x56   :  { %v210_v62 = vrot.slane %v209_v55, 2  ;;  %v216_v63 = vmax.f32 %v178_v54, 1.0  ;;  %v185_v1 = vadd.f32 %v184_v56, %v183_v49  ;;  %v204_v4 = vadd.f32 %v203_v59, %v202_v52 }
  0x57   :  { %v191_v2 = vrot.slane %v190_v57, 1  ;;  %v198_v3 = vrot.slane %v197_v58, 1  ;;  %v139_v5 = vadd.f32 %v138_v33, %v137_v11  ;;  %v146_v6 = vadd.f32 %v145_v53, %v144_v19 }
  0x58   :  { %v211_v8 = vadd.f32 %v210_v62, %v209_v55  ;;  %1697 = vrcp.f32 %v216_v63  ;;  %v205_v15 = vrot.slane %v204_v4, 1  ;;  %v217_v13 = vmax.f32 %v185_v1, 1.0 }
  0x59   :  { %v192_v10 = vadd.f32 %v191_v2, %v190_v57  ;;  %v199_v14 = vadd.f32 %v198_v3, %v197_v58  ;;  %v120_v17 = vadd.f32 %v119_v18, %v1894_v7  ;;  %v133_v21 = vrot.slane %v1907_v32, 2 }
  0x5a   :  { %v153_v23 = vadd.f32 %v152_v61, %v151_v20  ;;  %v212_v26 = vrot.slane %v211_v8, 1  ;;  %v206_v27 = vadd.f32 %v205_v15, %v204_v4  ;;  %1699 = vrcp.f32 %v217_v13  ;;  %v681_v4 = vld [vmem:[#allocation5 + $0x5e0] sm:$0xff] }
  0x5b   :  { %v218_v29 = vmax.f32 %v192_v10, 1.0  ;;  %v219_v30 = vmax.f32 %v199_v14, 1.0  ;;  %v108_v11 = vadd.f32 %v107_v22, %v1896_v9  ;;  %v127_v19 = vadd.f32 %v126_v28, %v1898_v12  ;;  %1474 = vmatprep.subr.mxu0 %v681_v4  ;;  %v680_v10 = vld [vmem:[#allocation5 + $0x5c0] sm:$0xff] }
  0x5c   :  { %v140_v31 = vrot.slane %v139_v5, 2  ;;  %v213_v33 = vadd.f32 %v212_v26, %v211_v8  ;;  %v115_v34 = vadd.f32 %v114_v60, %v1900_v16  ;;  %v147_v35 = vrot.slane %v146_v6, 2  ;;  %v697_v8 = vld [vmem:[#allocation5 + $0x7e0] sm:$0xff] }
  0x5d   :  { %v220_v7 = vmax.f32 %v206_v27, 1.0  ;;  %1701 = vrcp.f32 %v218_v29  ;;  %v121_v18 = vrot.slane %v120_v17, 1  ;;  %v154_v20 = vrot.slane %v153_v23, 2  ;;  %v712_v14 = vld [vmem:[#allocation5 + $0x9c0] sm:$0xff] }
  0x5e   :  { %v221_v38 = vmax.f32 %v213_v33, 1.0  ;;  %1703 = vrcp.f32 %v219_v30  ;;  %v1694_v39 = vpop.eup %1693  ;;  %v134_v40 = vadd.f32 %v133_v21, %v1907_v32  ;;  %v141_v41 = vadd.f32 %v140_v31, %v139_v5  ;;  %v713_v5 = vld [vmem:[#allocation5 + $0x9e0] sm:$0xff] }
  0x5f   :  { %1705 = vrcp.f32 %v220_v7  ;;  %v128_v22 = vrot.slane %v127_v19, 1  ;;  %v148_v12 = vadd.f32 %v147_v35, %v146_v6  ;;  %v230_v28 = vmul.f32 %v1694_v39, %v108_v11  ;;  %v665_v6 = vld [vmem:[#allocation5 + $0x3e0] sm:$0xff]  ;;  %1509 = vmatprep.subr.mxu1 %v713_v5 }
  0x60   :  { %1707 = vrcp.f32 %v221_v38  ;;  %v122_v24 = vadd.f32 %v121_v18, %v120_v17  ;;  %v155_v25 = vadd.f32 %v154_v20, %v153_v23  ;;  %v135_v42 = vrot.slane %v134_v40, 1  ;;  %v664_v15 = vld [vmem:[#allocation5 + $0x3c0] sm:$0xff] }
  0x61   :  { %v1696_v9 = vpop.eup %1695  ;;  %v142_v43 = vrot.slane %v141_v41, 1  ;;  %v129_v45 = vadd.f32 %v128_v22, %v127_v19  ;;  %v149_v46 = vrot.slane %v148_v12, 1  ;;  %v696_v13 = vld [vmem:[#allocation5 + $0x7c0] sm:$0xff] }
  0x62   :  { %v231_v16 = vmul.f32 %v1696_v9, %v115_v34  ;;  %v156_v48 = vrot.slane %v155_v25, 1  ;;  %v136_v36 = vadd.f32 %v135_v42, %v134_v40  ;;  %v679_v17 = vld [vmem:[#allocation5 + $0x5a0] sm:$0xff] }
  0x63   :  { %v143_v49 = vadd.f32 %v142_v43, %v141_v41  ;;  %v150_v51 = vadd.f32 %v149_v46, %v148_v12  ;;  %v711_v21 = vld [vmem:[#allocation5 + $0x9a0] sm:$0xff] }
  0x64   :  { %v333_v47 = vsel %vm332_vm0, %v231_v16, %v230_v28  ;;  %v157_v54 = vadd.f32 %v156_v48, %v155_v25  ;;  %v663_v23 = vld [vmem:[#allocation5 + $0x3a0] sm:$0xff] }
  0x65   :  { %v1698_v44 = vpop.eup %1697  ;;  %v695_v26 = vld [vmem:[#allocation5 + $0x7a0] sm:$0xff] }
  0x66   :  { %v232_v32 = vmul.f32 %v1698_v44, %v122_v24  ;;  %v678_v27 = vld [vmem:[#allocation5 + $0x580] sm:$0xff] }
  0x67   :  { %v1700_v37 = vpop.eup %1699  ;;  %v710_v29 = vld [vmem:[#allocation5 + $0x980] sm:$0xff] }
  0x68   :  { %v335_v50 = vsel %vm334_vm1, %v232_v32, %v333_v47  ;;  %v233_v52 = vmul.f32 %v1700_v37, %v129_v45  ;;  %v662_v30 = vld [vmem:[#allocation5 + $0x380] sm:$0xff] }
  0x69   :  { %v694_v11 = vld [vmem:[#allocation5 + $0x780] sm:$0xff] }
  0x6a   :  { %v1702_v53 = vpop.eup %1701  ;;  %v337_v57 = vsel %vm336_vm2, %v233_v52, %v335_v50  ;;  %v677_v19 = vld [vmem:[#allocation5 + $0x560] sm:$0xff] }
  0x6b   :  { %v1704_v55 = vpop.eup %1703  ;;  %v234_v56 = vmul.f32 %v1702_v53, %v136_v36  ;;  %v709_v31 = vld [vmem:[#allocation5 + $0x960] sm:$0xff] }
  0x6c   :  { %v1706_v58 = vpop.eup %1705  ;;  %v235_v59 = vmul.f32 %v1704_v55, %v143_v49  ;;  %v661_v33 = vld [vmem:[#allocation5 + $0x360] sm:$0xff] }
  0x6d   :  { %v1708_v60 = vpop.eup %1707  ;;  %v236_v61 = vmul.f32 %v1706_v58, %v150_v51  ;;  %v339_v62 = vsel %vm338_vm3, %v234_v56, %v337_v57  ;;  %v693_v34 = vld [vmem:[#allocation5 + $0x760] sm:$0xff] }
  0x6e   :  { %v237_v63 = vmul.f32 %v1708_v60, %v157_v54  ;;  %v341_v1 = vsel %vm340_vm4, %v235_v59, %v339_v62  ;;  %v676_v35 = vld [vmem:[#allocation5 + $0x540] sm:$0xff] }
  0x6f   :  { %v343_v2 = vsel %vm342_vm5, %v236_v61, %v341_v1  ;;  %v708_v7 = vld [vmem:[#allocation5 + $0x940] sm:$0xff] }
  0x70   :  { %v1918_v3 = vsel %vm344_vm6, %v237_v63, %v343_v2  ;;  %v660_v18 = vld [vmem:[#allocation5 + $0x340] sm:$0xff] }
  0x71   :  { %412 = vmatmul.mubr.f32.vlgmr.msra.gmra.mxu0 %v1918_v3  ;;  %483 = vmatmul.mubr.f32.vlgmr.msra.gmra.mxu1 %v1918_v3  ;;  %v692_v20 = vld [vmem:[#allocation5 + $0x740] sm:$0xff] }
  0x72   :  { %1475 = vmatpush3.msra.mxu0 %v665_v6  ;;  %1510 = vmatpush3.msra.mxu1 %v697_v8  ;;  %v675_v38 = vld [vmem:[#allocation5 + $0x520] sm:$0xff]  ;;  %v893_v6 = vld [vmem:[#allocation5 + $0xbe8] sm:$0xff]  ;;  %v304_v8 = vlaneseq }
  0x73   :  { %1476 = vmatprep.subr.mxu0 %v680_v10  ;;  %1511 = vmatprep.subr.mxu1 %v712_v14  ;;  %v707_v39 = vld [vmem:[#allocation5 + $0x920] sm:$0xff] }
  0x74   :  { %1477 = vmatpush3.msra.mxu0 %v664_v15  ;;  %1512 = vmatpush3.msra.mxu1 %v696_v13  ;;  %v659_v40 = vld [vmem:[#allocation5 + $0x320] sm:$0xff]  ;;  %v305_v10 = vshrl.u32 %v304_v8, 7 }
  0x75   :  { %1478 = vmatprep.subr.mxu0 %v679_v17  ;;  %1513 = vmatprep.subr.mxu1 %v711_v21  ;;  %v691_v41 = vld [vmem:[#allocation5 + $0x720] sm:$0xff] }
  0x76   :  { %1479 = vmatpush3.msra.mxu0 %v663_v23  ;;  %1514 = vmatpush3.msra.mxu1 %v695_v26  ;;  %v674_v9 = vld [vmem:[#allocation5 + $0x500] sm:$0xff]  ;;  %v1922_v14 = vsub.s32 0, %v305_v10  ;;  %v1924_v15 = vsub.s32 2, %v305_v10  ;;  %v1926_v17 = vsub.s32 1, %v305_v10  ;;  %v1928_v21 = vsub.s32 3, %v305_v10 }
  0x77   :  { %1480 = vmatprep.subr.mxu0 %v678_v27  ;;  %1515 = vmatprep.subr.mxu1 %v710_v29  ;;  %v706_v22 = vld [vmem:[#allocation5 + $0x900] sm:$0xff] }
  0x78   :  { %1481 = vmatpush3.msra.mxu0 %v662_v30  ;;  %1516 = vmatpush3.msra.mxu1 %v694_v11  ;;  %v658_v12 = vld [vmem:[#allocation5 + $0x300] sm:$0xff] }
  0x79   :  { %1482 = vmatprep.subr.mxu0 %v677_v19  ;;  %1517 = vmatprep.subr.mxu1 %v709_v31  ;;  %v690_v28 = vld [vmem:[#allocation5 + $0x700] sm:$0xff] }
  0x7a   :  { %1483 = vmatpush3.msra.mxu0 %v661_v33  ;;  %1518 = vmatpush3.msra.mxu1 %v693_v34  ;;  %v673_v24 = vld [vmem:[#allocation5 + $0x4e0] sm:$0xff] }
  0x7b   :  { %1484 = vmatprep.subr.mxu0 %v676_v35  ;;  %1519 = vmatprep.subr.mxu1 %v708_v7  ;;  %v705_v25 = vld [vmem:[#allocation5 + $0x8e0] sm:$0xff] }
  0x7c   :  { %1485 = vmatpush3.msra.mxu0 %v660_v18  ;;  %1520 = vmatpush3.msra.mxu1 %v692_v20  ;;  %v657_v16 = vld [vmem:[#allocation5 + $0x2e0] sm:$0xff] }
  0x7d   :  { %1486 = vmatprep.subr.mxu0 %v675_v38  ;;  %1521 = vmatprep.subr.mxu1 %v707_v39  ;;  %v689_v42 = vld [vmem:[#allocation5 + $0x6e0] sm:$0xff] }
  0x7e   :  { %1487 = vmatpush3.msra.mxu0 %v659_v40  ;;  %1522 = vmatpush3.msra.mxu1 %v691_v41  ;;  %v672_v43 = vld [vmem:[#allocation5 + $0x4c0] sm:$0xff] }
  0x7f   :  { %1488 = vmatprep.subr.mxu0 %v674_v9  ;;  %1523 = vmatprep.subr.mxu1 %v706_v22  ;;  %v704_v44 = vld [vmem:[#allocation5 + $0x8c0] sm:$0xff] }
  0x80   :  { %1489 = vmatpush3.msra.mxu0 %v658_v12  ;;  %1524 = vmatpush3.msra.mxu1 %v690_v28  ;;  %v656_v45 = vld [vmem:[#allocation5 + $0x2c0] sm:$0xff] }
  0x81   :  { %1490 = vmatprep.subr.mxu0 %v673_v24  ;;  %1525 = vmatprep.subr.mxu1 %v705_v25  ;;  %v688_v46 = vld [vmem:[#allocation5 + $0x6c0] sm:$0xff] }
  0x82   :  { %1491 = vmatpush3.msra.mxu0 %v657_v16  ;;  %1526 = vmatpush3.msra.mxu1 %v689_v42  ;;  %v671_v47 = vld [vmem:[#allocation5 + $0x4a0] sm:$0xff] }
  0x83   :  { %v703_v48 = vld [vmem:[#allocation5 + $0x8a0] sm:$0xff]  ;;  %1492 = vmatprep.subr.mxu0 %v672_v43  ;;  %1527 = vmatprep.subr.mxu1 %v704_v44 }
  0x84   :  { %v655_v32 = vld [vmem:[#allocation5 + $0x2a0] sm:$0xff]  ;;  %1493 = vmatpush3.msra.mxu0 %v656_v45  ;;  %1528 = vmatpush3.msra.mxu1 %v688_v46 }
  0x85   :  { %v687_v36 = vld [vmem:[#allocation5 + $0x6a0] sm:$0xff]  ;;  %1494 = vmatprep.subr.mxu0 %v671_v47  ;;  %1529 = vmatprep.subr.mxu1 %v703_v48 }
  0x86   :  { %v670_v37 = vld [vmem:[#allocation5 + $0x480] sm:$0xff]  ;;  %1495 = vmatpush3.msra.mxu0 %v655_v32  ;;  %1530 = vmatpush3.msra.mxu1 %v687_v36 }
  0x87   :  { %v702_v49 = vld [vmem:[#allocation5 + $0x880] sm:$0xff]  ;;  %1496 = vmatprep.subr.mxu0 %v670_v37 }
  0x88   :  { %v654_v50 = vld [vmem:[#allocation5 + $0x280] sm:$0xff]  ;;  %1531 = vmatprep.subr.mxu1 %v702_v49 }
  0x89   :  { %v686_v51 = vld [vmem:[#allocation5 + $0x680] sm:$0xff]  ;;  %1497 = vmatpush3.msra.mxu0 %v654_v50 }
  0x8a   :  { %v669_v52 = vld [vmem:[#allocation5 + $0x460] sm:$0xff]  ;;  %1532 = vmatpush3.msra.mxu1 %v686_v51 }
  0x8b   :  { %v701_v53 = vld [vmem:[#allocation5 + $0x860] sm:$0xff]  ;;  %1498 = vmatprep.subr.mxu0 %v669_v52 }
  0x8c   :  { %v653_v54 = vld [vmem:[#allocation5 + $0x260] sm:$0xff]  ;;  %1533 = vmatprep.subr.mxu1 %v701_v53 }
  0x8d   :  { %v685_v55 = vld [vmem:[#allocation5 + $0x660] sm:$0xff]  ;;  %1499 = vmatpush3.msra.mxu0 %v653_v54 }
  0x8e   :  { %v668_v56 = vld [vmem:[#allocation5 + $0x440] sm:$0xff]  ;;  %1534 = vmatpush3.msra.mxu1 %v685_v55 }
  0x8f   :  { %v700_v57 = vld [vmem:[#allocation5 + $0x840] sm:$0xff]  ;;  %1500 = vmatprep.subr.mxu0 %v668_v56 }
  0x90   :  { %v652_v58 = vld [vmem:[#allocation5 + $0x240] sm:$0xff]  ;;  %1535 = vmatprep.subr.mxu1 %v700_v57 }
  0x91   :  { %v684_v59 = vld [vmem:[#allocation5 + $0x640] sm:$0xff]  ;;  %1501 = vmatpush3.msra.mxu0 %v652_v58 }
  0x92   :  { %v667_v60 = vld [vmem:[#allocation5 + $0x420] sm:$0xff]  ;;  %1536 = vmatpush3.msra.mxu1 %v684_v59 }
  0x93   :  { %v699_v61 = vld [vmem:[#allocation5 + $0x820] sm:$0xff]  ;;  %1502 = vmatprep.subr.mxu0 %v667_v60 }
  0x94   :  { %v651_v62 = vld [vmem:[#allocation5 + $0x220] sm:$0xff]  ;;  %1537 = vmatprep.subr.mxu1 %v699_v61 }
  0x95   :  { %v683_v63 = vld [vmem:[#allocation5 + $0x620] sm:$0xff]  ;;  %1503 = vmatpush3.msra.mxu0 %v651_v62 }
  0x96   :  { %v666_v1 = vld [vmem:[#allocation5 + $0x400] sm:$0xff]  ;;  %1538 = vmatpush3.msra.mxu1 %v683_v63 }
  0x97   :  { %v698_v2 = vld [vmem:[#allocation5 + $0x800] sm:$0xff]  ;;  %1504 = vmatprep.subr.mxu0 %v666_v1 }
  0x98   :  { %v650_v4 = vld [vmem:[#allocation5 + $0x200] sm:$0xff]  ;;  %1539 = vmatprep.subr.mxu1 %v698_v2 }
  0x99   :  { %1505 = vmatpush3.msra.mxu0 %v650_v4  ;;  %v682_v5 = vld [vmem:[#allocation5 + $0x600] sm:$0xff] }
  0x9a   :  { %1540 = vmatpush3.msra.mxu1 %v682_v5  ;;  %906 = vmatprep.subr.mxu0 %v893_v6  ;;  %v302_v13 = vld [vmem:[#allocation7] sm:$0xf] }
  0x9b   :  { %v307_v23 = vrot.slane %v302_v13, %v1922_v14  ;;  %v315_v26 = vrot.slane %v302_v13, %v1924_v15  ;;  %v311_v27 = vrot.slane %v302_v13, %v1926_v17  ;;  %v319_v29 = vrot.slane %v302_v13, %v1928_v21 }
 0x131   :  { %v413_v30 = vpop.f32.mrf.mxu0  ;;  %v484_v11 = vpop.f32.mrf.mxu1 }
 0x132   :  { %v414_v19 = vadd.f32 %v413_v30, %v307_v23  ;;  %v485_v31 = vadd.f32 %v484_v11, %v315_v26 }
 0x133   :  { %v415_v33 = vpop.f32.mrf.mxu0  ;;  %v486_v34 = vpop.f32.mrf.mxu1 }
 0x134   :  { %v491_v35 = vrot.slane %v414_v19, 4  ;;  %v503_v7 = vrot.slane %v485_v31, 4  ;;  %v416_v18 = vadd.f32 %v415_v33, %v311_v27  ;;  %v487_v20 = vadd.f32 %v486_v34, %v319_v29 }
 0x136   :  { %v492_v38 = vadd.f32 %v491_v35, %v414_v19  ;;  %v504_v39 = vadd.f32 %v503_v7, %v485_v31  ;;  %v497_v40 = vrot.slane %v416_v18, 4  ;;  %v509_v41 = vrot.slane %v487_v20, 4 }
 0x138   :  { %v493_v9 = vrot.slane %v492_v38, 2  ;;  %v505_v22 = vrot.slane %v504_v39, 2  ;;  %v498_v12 = vadd.f32 %v497_v40, %v416_v18  ;;  %v510_v28 = vadd.f32 %v509_v41, %v487_v20 }
 0x13a   :  { %v494_v24 = vadd.f32 %v493_v9, %v492_v38  ;;  %v506_v25 = vadd.f32 %v505_v22, %v504_v39  ;;  %v499_v16 = vrot.slane %v498_v12, 2  ;;  %v511_v42 = vrot.slane %v510_v28, 2 }
 0x13c   :  { %v495_v43 = vrot.slane %v494_v24, 1  ;;  %v507_v44 = vrot.slane %v506_v25, 1  ;;  %v500_v45 = vadd.f32 %v499_v16, %v498_v12  ;;  %v512_v46 = vadd.f32 %v511_v42, %v510_v28  ;;  %v490_v42 = vld [vmem:[#allocation7 + $0x8] sm:$0xf] }
 0x13e   :  { %v496_v47 = vadd.f32 %v495_v43, %v494_v24  ;;  %v508_v48 = vadd.f32 %v507_v44, %v506_v25  ;;  %v501_v32 = vrot.slane %v500_v45, 1  ;;  %v513_v36 = vrot.slane %v512_v46, 1  ;;  %v489_v24 = vld [vmem:[#allocation7 + $0x4] sm:$0xf] }
 0x13f   :  { %v560_v25 = vrot.slane %v489_v24, %v1922_v14  ;;  %v568_v16 = vrot.slane %v489_v24, %v1924_v15  ;;  %v564_v43 = vrot.slane %v489_v24, %v1926_v17 }
 0x140   :  { %v516_v37 = vmul.f32 0.125, %v496_v47  ;;  %v518_v49 = vmul.f32 0.125, %v508_v48  ;;  %v502_v50 = vadd.f32 %v501_v32, %v500_v45  ;;  %v514_v51 = vadd.f32 %v513_v36, %v512_v46 }
 0x141   :  { %v572_v45 = vrot.slane %v489_v24, %v1928_v21  ;;  %v597_v46 = vrot.slane %v490_v42, %v1922_v14  ;;  %v605_v32 = vrot.slane %v490_v42, %v1924_v15  ;;  %v882_v24 = vld [vmem:[#allocation5 + $0xb40] sm:$0xff] }
 0x142   :  { %v520_v52 = vsub.f32 %v414_v19, %v516_v37  ;;  %v522_v53 = vsub.f32 %v485_v31, %v518_v49  ;;  %v517_v54 = vmul.f32 0.125, %v502_v50  ;;  %v519_v55 = vmul.f32 0.125, %v514_v51 }
 0x143   :  { %v601_v51 = vrot.slane %v490_v42, %v1926_v17 }
 0x144   :  { %v524_v56 = vmul.f32 %v520_v52, %v520_v52  ;;  %v526_v57 = vmul.f32 %v522_v53, %v522_v53  ;;  %v521_v58 = vsub.f32 %v416_v18, %v517_v54  ;;  %v523_v59 = vsub.f32 %v487_v20, %v519_v55 }
 0x145   :  { %v577_v44 = vmul.f32 %v560_v25, %v520_v52  ;;  %v579_v48 = vmul.f32 %v568_v16, %v522_v53  ;;  %v881_v25 = vld [vmem:[#allocation5 + $0xb28] sm:$0xff]  ;;  %v880_v16 = vld [vmem:[#allocation5 + $0xb20] sm:$0xff] }
 0x146   :  { %v528_v60 = vrot.slane %v524_v56, 4  ;;  %v540_v61 = vrot.slane %v526_v57, 4  ;;  %v525_v62 = vmul.f32 %v521_v58, %v521_v58  ;;  %v527_v63 = vmul.f32 %v523_v59, %v523_v59 }
 0x147   :  { %v578_v50 = vmul.f32 %v564_v43, %v521_v58  ;;  %v580_v55 = vmul.f32 %v572_v45, %v523_v59  ;;  %v878_v43 = vld [vmem:[#allocation5 + $0xb00] sm:$0xff] }
 0x148   :  { %v529_v1 = vadd.f32 %v528_v60, %v524_v56  ;;  %v541_v2 = vadd.f32 %v540_v61, %v526_v57  ;;  %v534_v4 = vrot.slane %v525_v62, 4  ;;  %v546_v5 = vrot.slane %v527_v63, 4  ;;  %v876_v45 = vld [vmem:[#allocation5 + $0xae0] sm:$0xff] }
 0x149   :  { %v609_v56 = vrot.slane %v490_v42, %v1928_v21  ;;  %v879_v42 = vld [vmem:[#allocation5 + $0xb08] sm:$0xff] }
 0x14a   :  { %v530_v6 = vrot.slane %v529_v1, 2  ;;  %v542_v8 = vrot.slane %v541_v2, 2  ;;  %v535_v10 = vadd.f32 %v534_v4, %v525_v62  ;;  %v547_v13 = vadd.f32 %v546_v5, %v527_v63 }
 0x14c   :  { %v531_v23 = vadd.f32 %v530_v6, %v529_v1  ;;  %v543_v26 = vadd.f32 %v542_v8, %v541_v2  ;;  %v536_v27 = vrot.slane %v535_v10, 2  ;;  %v548_v29 = vrot.slane %v547_v13, 2 }
 0x14e   :  { %v532_v30 = vrot.slane %v531_v23, 1  ;;  %v544_v11 = vrot.slane %v543_v26, 1  ;;  %v537_v19 = vadd.f32 %v536_v27, %v535_v10  ;;  %v549_v31 = vadd.f32 %v548_v29, %v547_v13 }
 0x150   :  { %v533_v33 = vadd.f32 %v532_v30, %v531_v23  ;;  %v545_v34 = vadd.f32 %v544_v11, %v543_v26  ;;  %v538_v35 = vrot.slane %v537_v19, 1  ;;  %v550_v7 = vrot.slane %v549_v31, 1 }
 0x152   :  { %v552_v18 = vmul.f32 0.125, %v533_v33  ;;  %v554_v20 = vmul.f32 0.125, %v545_v34  ;;  %v539_v38 = vadd.f32 %v538_v35, %v537_v19  ;;  %v551_v39 = vadd.f32 %v550_v7, %v549_v31  ;;  %v892_v7 = vld [vmem:[#allocation5 + $0xbe0] sm:$0xff] }
 0x154   :  { %v581_v40 = vadd.f32 1e-05, %v552_v18  ;;  %v583_v41 = vadd.f32 1e-05, %v554_v20  ;;  %v553_v9 = vmul.f32 0.125, %v539_v38  ;;  %v555_v22 = vmul.f32 0.125, %v551_v39 }
 0x155   :  { %v891_v20 = vld [vmem:[#allocation5 + $0xbc8] sm:$0xff]  ;;  %v890_v38 = vld [vmem:[#allocation5 + $0xbc0] sm:$0xff] }
 0x156   :  { %1709 = vrsqrt.f32 %v581_v40  ;;  %v582_v12 = vadd.f32 1e-05, %v553_v9  ;;  %v584_v28 = vadd.f32 1e-05, %v555_v22  ;;  %v889_v39 = vld [vmem:[#allocation5 + $0xba8] sm:$0xff]  ;;  %v888_v40 = vld [vmem:[#allocation5 + $0xba0] sm:$0xff] }
 0x157   :  { %1711 = vrsqrt.f32 %v583_v41  ;;  %v887_v41 = vld [vmem:[#allocation5 + $0xb88] sm:$0xff]  ;;  %v886_v9 = vld [vmem:[#allocation5 + $0xb80] sm:$0xff] }
 0x158   :  { %1713 = vrsqrt.f32 %v582_v12  ;;  %v885_v22 = vld [vmem:[#allocation5 + $0xb68] sm:$0xff]  ;;  %v884_v12 = vld [vmem:[#allocation5 + $0xb60] sm:$0xff] }
 0x159   :  { %1715 = vrsqrt.f32 %v584_v28  ;;  %v883_v28 = vld [vmem:[#allocation5 + $0xb48] sm:$0xff] }
 0x163   :  { %v1710_v47 = vpop.eup %1709 }
 0x164   :  { %v1712_v36 = vpop.eup %1711  ;;  %v589_v37 = vmul.f32 %v1710_v47, %v577_v44  ;;  %v877_v44 = vld [vmem:[#allocation5 + $0xae8] sm:$0xff]  ;;  %v874_v47 = vld [vmem:[#allocation5 + $0xac0] sm:$0xff] }
 0x165   :  { %v591_v49 = vmul.f32 %v1712_v36, %v579_v48  ;;  %v1714_v54 = vpop.eup %1713  ;;  %v873_v48 = vld [vmem:[#allocation5 + $0xaa8] sm:$0xff] }
 0x166   :  { %v614_v57 = vadd.f32 %v597_v46, %v589_v37  ;;  %v1716_v52 = vpop.eup %1715  ;;  %v590_v60 = vmul.f32 %v1714_v54, %v578_v50  ;;  %v875_v46 = vld [vmem:[#allocation5 + $0xac8] sm:$0xff]  ;;  %v870_v37 = vld [vmem:[#allocation5 + $0xa80] sm:$0xff] }
 0x167   :  { %v616_v61 = vadd.f32 %v605_v32, %v591_v49  ;;  %v592_v62 = vmul.f32 %v1716_v52, %v580_v55  ;;  %v872_v32 = vld [vmem:[#allocation5 + $0xaa0] sm:$0xff]  ;;  %v871_v36 = vld [vmem:[#allocation5 + $0xa88] sm:$0xff] }
 0x168   :  { %v1458_v63 = vmul.f32 -1.702, %v614_v57  ;;  %v615_v1 = vadd.f32 %v601_v51, %v590_v60  ;;  %v869_v49 = vld [vmem:[#allocation5 + $0xa68] sm:$0xff]  ;;  %v868_v50 = vld [vmem:[#allocation5 + $0xa60] sm:$0xff] }
 0x169   :  { %v1460_v53 = vmul.f32 -1.702, %v616_v61  ;;  %v617_v2 = vadd.f32 %v609_v56, %v592_v62  ;;  %v867_v51 = vld [vmem:[#allocation5 + $0xa48] sm:$0xff]  ;;  %v866_v54 = vld [vmem:[#allocation5 + $0xa40] sm:$0xff] }
 0x16a   :  { %v626_v15 = vmul.f32 1.442695, %v1458_v63  ;;  %v1459_v4 = vmul.f32 -1.702, %v615_v1  ;;  %v865_v55 = vld [vmem:[#allocation5 + $0xa28] sm:$0xff]  ;;  %v864_v56 = vld [vmem:[#allocation5 + $0xa20] sm:$0xff] }
 0x16b   :  { %v630_v5 = vmul.f32 1.442695, %v1460_v53  ;;  %v1461_v6 = vmul.f32 -1.702, %v617_v2  ;;  %v862_v52 = vld [vmem:[#allocation5 + $0xa00] sm:$0xff] }
 0x16c   :  { %1717 = vpow2.f32 %v626_v15  ;;  %v628_v58 = vmul.f32 1.442695, %v1459_v4  ;;  %v1462_v62 = vld [vmem:[#allocation7 + $0xc] ss:$0 sm:$0xff] }
 0x16d   :  { %1719 = vpow2.f32 %v630_v5  ;;  %v632_v8 = vmul.f32 1.442695, %v1461_v6  ;;  %v1090_v6 = vld [vmem:[#allocation5 + $0xfe0] sm:$0xff] }
 0x16e   :  { %1721 = vpow2.f32 %v628_v58  ;;  %v1074_v58 = vld [vmem:[#allocation5 + $0xde0] sm:$0xff]  ;;  %1544 = vmatprep.subr.mxu1 %v1090_v6 }
 0x16f   :  { %1723 = vpow2.f32 %v632_v8  ;;  %v1089_v8 = vld [vmem:[#allocation5 + $0xfc0] sm:$0xff] }
 0x179   :  { %v1718_v21 = vpop.eup %1717 }
 0x17a   :  { %v1720_v59 = vpop.eup %1719  ;;  %v634_v10 = vadd.f32 1.0, %v1718_v21  ;;  %v1073_v21 = vld [vmem:[#allocation5 + $0xdc0] sm:$0xff] }
 0x17b   :  { %v636_v13 = vadd.f32 1.0, %v1720_v59  ;;  %v1722_v23 = vpop.eup %1721  ;;  %v1088_v59 = vld [vmem:[#allocation5 + $0xfa0] sm:$0xff] }
 0x17c   :  { %v1724_v26 = vpop.eup %1723  ;;  %v635_v27 = vadd.f32 1.0, %v1722_v23  ;;  %1725 = vrcp.f32 %v634_v10  ;;  %v1072_v10 = vld [vmem:[#allocation5 + $0xda0] sm:$0xff] }
 0x17d   :  { %v637_v29 = vadd.f32 1.0, %v1724_v26  ;;  %1727 = vrcp.f32 %v636_v13  ;;  %v1087_v13 = vld [vmem:[#allocation5 + $0xf80] sm:$0xff] }
 0x17e   :  { %1729 = vrcp.f32 %v635_v27  ;;  %v1071_v23 = vld [vmem:[#allocation5 + $0xd80] sm:$0xff] }
 0x17f   :  { %1731 = vrcp.f32 %v637_v29  ;;  %v1086_v26 = vld [vmem:[#allocation5 + $0xf60] sm:$0xff] }
 0x180   :  { %v1070_v27 = vld [vmem:[#allocation5 + $0xd60] sm:$0xff] }
 0x181   :  { %v1069_v29 = vld [vmem:[#allocation5 + $0xd40] sm:$0xff] }
 0x189   :  { %v1726_v30 = vpop.eup %1725 }
 0x18a   :  { %v1728_v11 = vpop.eup %1727  ;;  %v646_v35 = vmul.f32 %v1726_v30, %v614_v57  ;;  %v863_v57 = vld [vmem:[#allocation5 + $0xa08] sm:$0xff]  ;;  %v1084_v30 = vld [vmem:[#allocation5 + $0xf20] sm:$0xff] }
 0x18b   :  { %v1730_v19 = vpop.eup %1729  ;;  %v648_v18 = vmul.f32 %v1728_v11, %v616_v61  ;;  %v1068_v11 = vld [vmem:[#allocation5 + $0xd20] sm:$0xff] }
 0x18c   :  { %v1732_v31 = vpop.eup %1731  ;;  %v647_v33 = vmul.f32 %v1730_v19, %v615_v1  ;;  %v1083_v19 = vld [vmem:[#allocation5 + $0xf00] sm:$0xff] }
 0x18d   :  { %v649_v34 = vmul.f32 %v1732_v31, %v617_v2  ;;  %v1067_v31 = vld [vmem:[#allocation5 + $0xd00] sm:$0xff] }
 0x18e   :  { %785 = vmatprep.mubr.f32.mxu0 %v647_v33  ;;  %v1082_v33 = vld [vmem:[#allocation5 + $0xee0] sm:$0xff] }
 0x18f   :  { %855 = vmatprep.mubr.f32.mxu1 %v649_v34  ;;  %786 = vmatmul.mubr.f32.vlgmr.msra.gmra.mxu0 %v646_v35  ;;  %v1066_v34 = vld [vmem:[#allocation5 + $0xce0] sm:$0xff] }
 0x190   :  { %856 = vmatmul.mubr.f32.vlgmr.msra.gmra.mxu1 %v648_v18  ;;  %907 = vmatpush1.msra.mxu0 %v892_v7  ;;  %v1081_v35 = vld [vmem:[#allocation5 + $0xec0] sm:$0xff] }
 0x191   :  { %908 = vmatprep.subr.mxu0 %v891_v20  ;;  %970 = vmatprep.mubr.f32.mxu0 %v1850_v0  ;;  %v1065_v7 = vld [vmem:[#allocation5 + $0xcc0] sm:$0xff] }
 0x192   :  { %909 = vmatpush1.msra.mxu0 %v890_v38  ;;  %1545 = vmatpush3.msra.mxu1 %v1074_v58  ;;  %v1080_v18 = vld [vmem:[#allocation5 + $0xea0] sm:$0xff] }
 0x193   :  { %910 = vmatprep.subr.mxu0 %v889_v39  ;;  %1546 = vmatprep.subr.mxu1 %v1089_v8  ;;  %v1064_v20 = vld [vmem:[#allocation5 + $0xca0] sm:$0xff] }
 0x194   :  { %911 = vmatpush1.msra.mxu0 %v888_v40  ;;  %1547 = vmatpush3.msra.mxu1 %v1073_v21  ;;  %v1079_v38 = vld [vmem:[#allocation5 + $0xe80] sm:$0xff] }
 0x195   :  { %912 = vmatprep.subr.mxu0 %v887_v41  ;;  %1548 = vmatprep.subr.mxu1 %v1088_v59  ;;  %v1063_v39 = vld [vmem:[#allocation5 + $0xc80] sm:$0xff] }
 0x196   :  { %913 = vmatpush1.msra.mxu0 %v886_v9  ;;  %1549 = vmatpush3.msra.mxu1 %v1072_v10  ;;  %v1078_v40 = vld [vmem:[#allocation5 + $0xe60] sm:$0xff] }
 0x197   :  { %914 = vmatprep.subr.mxu0 %v885_v22  ;;  %1550 = vmatprep.subr.mxu1 %v1087_v13  ;;  %v1062_v41 = vld [vmem:[#allocation5 + $0xc60] sm:$0xff] }
 0x198   :  { %915 = vmatpush1.msra.mxu0 %v884_v12  ;;  %1551 = vmatpush3.msra.mxu1 %v1071_v23  ;;  %v1077_v9 = vld [vmem:[#allocation5 + $0xe40] sm:$0xff] }
 0x199   :  { %916 = vmatprep.subr.mxu0 %v883_v28  ;;  %1552 = vmatprep.subr.mxu1 %v1086_v26  ;;  %v1061_v22 = vld [vmem:[#allocation5 + $0xc40] sm:$0xff] }
 0x19a   :  { %917 = vmatpush1.msra.mxu0 %v882_v24  ;;  %1553 = vmatpush3.msra.mxu1 %v1070_v27  ;;  %v1076_v12 = vld [vmem:[#allocation5 + $0xe20] sm:$0xff] }
 0x19b   :  { %918 = vmatprep.subr.mxu0 %v881_v25  ;;  %v1060_v28 = vld [vmem:[#allocation5 + $0xc20] sm:$0xff] }
 0x19c   :  { %919 = vmatpush1.msra.mxu0 %v880_v16  ;;  %v1075_v24 = vld [vmem:[#allocation5 + $0xe00] sm:$0xff]  ;;  %v894_v16 = vld [vmem:[#allocation7 + $0xd] sm:$0x3] }
 0x19d   :  { %920 = vmatprep.subr.mxu0 %v879_v42  ;;  %v1059_v25 = vld [vmem:[#allocation5 + $0xc00] sm:$0xff]  ;;  %v899_v42 = vrot.slane %v894_v16, %v1922_v14 }
 0x19e   :  { %921 = vmatpush1.msra.mxu0 %v878_v43  ;;  %v903_v43 = vrot.slane %v894_v16, %v1926_v17 }
 0x19f   :  { %922 = vmatprep.subr.mxu0 %v877_v44 }
 0x1a0   :  { %923 = vmatpush1.msra.mxu0 %v876_v45 }
 0x1a1   :  { %924 = vmatprep.subr.mxu0 %v875_v46 }
 0x1a2   :  { %925 = vmatpush1.msra.mxu0 %v874_v47 }
 0x1a3   :  { %926 = vmatprep.subr.mxu0 %v873_v48 }
 0x1a4   :  { %927 = vmatpush1.msra.mxu0 %v872_v32 }
 0x1a5   :  { %928 = vmatprep.subr.mxu0 %v871_v36 }
 0x1a6   :  { %929 = vmatpush1.msra.mxu0 %v870_v37 }
 0x1a7   :  { %930 = vmatprep.subr.mxu0 %v869_v49 }
 0x1a8   :  { %931 = vmatpush1.msra.mxu0 %v868_v50 }
 0x1a9   :  { %932 = vmatprep.subr.mxu0 %v867_v51 }
 0x1aa   :  { %933 = vmatpush1.msra.mxu0 %v866_v54 }
 0x1ab   :  { %934 = vmatprep.subr.mxu0 %v865_v55 }
 0x1ac   :  { %935 = vmatpush1.msra.mxu0 %v864_v56 }
 0x1ad   :  { %936 = vmatprep.subr.mxu0 %v863_v57 }
 0x1ae   :  { %937 = vmatpush1.msra.mxu0 %v862_v52 }
 0x1af   :  { %1613 = vmatprep.subr.mxu0 %v1850_v0 }
 0x24f   :  { %v1506_v60 = vpop.f32.mrf.mxu0 }
 0x250   :  { %v1541_v61 = vpop.f32.mrf.mxu1 }
 0x251   :  { %v1507_v63 = vpop.f32.mrf.mxu0 }
 0x252   :  { %v1508_v1 = vadd.f32 %v1507_v63, %v1506_v60  ;;  %v1542_v53 = vpop.f32.mrf.mxu1 }
 0x253   :  { %v1543_v15 = vadd.f32 %v1542_v53, %v1541_v61 }
 0x254   :  { %v788_v2 = vadd.f32 %v1508_v1, %v1462_v62 }
 0x256   :  { %v858_v4 = vadd.f32 %v1543_v15, %v788_v2 }
 0x258   :  { %v861_v5 = vadd.f32 %v858_v4, %v1918_v3  ;;  %v1085_v3 = vld [vmem:[#allocation5 + $0xf40] sm:$0xff] }
 0x259   :  { %1554 = vmatprep.subr.mxu1 %v1085_v3 }
 0x25a   :  { %1440 = vst [vmem:[#allocation8] sm:$0xff] %v861_v5  ;;  %971 = vmatmul.mubr.f32.vlgmr.msra.gmra.mxu0 %v861_v5  ;;  %1555 = vmatpush3.msra.mxu1 %v1069_v29 }
 0x25b   :  { %1556 = vmatprep.subr.mxu1 %v1084_v30  ;;  %v977_v30 = vld [vmem:[#allocation7 + $0xf] sm:$0x3]  ;;  %1645 = vmatprep.mubr.msk.f32.mxu0 %vm1851_vm7, %v1850_v0 }
 0x25c   :  { %1557 = vmatpush3.msra.mxu1 %v1068_v11  ;;  %v1015_v11 = vrot.slane %v977_v30, %v1922_v14 }
 0x25d   :  { %1558 = vmatprep.subr.mxu1 %v1083_v19  ;;  %v978_v19 = vld [vmem:[#allocation7 + $0x11] sm:$0x3] }
 0x25e   :  { %1559 = vmatpush3.msra.mxu1 %v1067_v31  ;;  %v1019_v31 = vrot.slane %v977_v30, %v1926_v17 }
 0x25f   :  { %1560 = vmatprep.subr.mxu1 %v1082_v33 }
 0x260   :  { %1561 = vmatpush3.msra.mxu1 %v1066_v34  ;;  %v1034_v34 = vrot.slane %v978_v19, %v1922_v14 }
 0x261   :  { %1562 = vmatprep.subr.mxu1 %v1081_v35 }
 0x262   :  { %1563 = vmatpush3.msra.mxu1 %v1065_v7 }
 0x263   :  { %1564 = vmatprep.subr.mxu1 %v1080_v18 }
 0x264   :  { %1565 = vmatpush3.msra.mxu1 %v1064_v20  ;;  %v1038_v20 = vrot.slane %v978_v19, %v1926_v17 }
 0x265   :  { %1566 = vmatprep.subr.mxu1 %v1079_v38 }
 0x266   :  { %1567 = vmatpush3.msra.mxu1 %v1063_v39 }
 0x267   :  { %1568 = vmatprep.subr.mxu1 %v1078_v40 }
 0x268   :  { %1569 = vmatpush3.msra.mxu1 %v1062_v41 }
 0x269   :  { %1570 = vmatprep.subr.mxu1 %v1077_v9 }
 0x26a   :  { %1571 = vmatpush3.msra.mxu1 %v1061_v22 }
 0x26b   :  { %1572 = vmatprep.subr.mxu1 %v1076_v12 }
 0x26c   :  { %1573 = vmatpush3.msra.mxu1 %v1060_v28 }
 0x26d   :  { %1574 = vmatprep.subr.mxu1 %v1075_v24 }
 0x26e   :  { %1575 = vmatpush3.msra.mxu1 %v1059_v25 }
 0x26f   :  { %1648 = vmatprep.subr.mxu1 %v1850_v0 }
 0x31a   :  { %v972_v44 = vpop.f32.mrf.mxu0 }
 0x31b   :  { %v973_v45 = vadd.f32 %v972_v44, %v899_v42 }
 0x31c   :  { %v974_v46 = vpop.f32.mrf.mxu0 }
 0x31d   :  { %v979_v47 = vrot.slane %v973_v45, 4  ;;  %v975_v48 = vadd.f32 %v974_v46, %v903_v43  ;;  %v1225_v46 = vld [vmem:[#allocation5 + $0x11c0] sm:$0xff] }
 0x31f   :  { %v980_v32 = vadd.f32 %v979_v47, %v973_v45  ;;  %v985_v36 = vrot.slane %v975_v48, 4  ;;  %v1224_v47 = vld [vmem:[#allocation5 + $0x11a0] sm:$0xff] }
 0x321   :  { %v981_v37 = vrot.slane %v980_v32, 2  ;;  %v986_v49 = vadd.f32 %v985_v36, %v975_v48  ;;  %v1221_v36 = vld [vmem:[#allocation5 + $0x1140] sm:$0xff] }
 0x323   :  { %v982_v50 = vadd.f32 %v981_v37, %v980_v32  ;;  %v987_v51 = vrot.slane %v986_v49, 2  ;;  %v1222_v32 = vld [vmem:[#allocation5 + $0x1160] sm:$0xff] }
 0x324   :  { %v1220_v37 = vld [vmem:[#allocation5 + $0x1120] sm:$0xff] }
 0x325   :  { %v983_v54 = vrot.slane %v982_v50, 1  ;;  %v988_v55 = vadd.f32 %v987_v51, %v986_v49  ;;  %v1219_v49 = vld [vmem:[#allocation5 + $0x1100] sm:$0xff] }
 0x326   :  { %v1217_v51 = vld [vmem:[#allocation5 + $0x10c0] sm:$0xff] }
 0x327   :  { %v984_v56 = vadd.f32 %v983_v54, %v982_v50  ;;  %v989_v57 = vrot.slane %v988_v55, 1  ;;  %v1218_v50 = vld [vmem:[#allocation5 + $0x10e0] sm:$0xff] }
 0x328   :  { %v1216_v54 = vld [vmem:[#allocation5 + $0x10a0] sm:$0xff] }
 0x329   :  { %v991_v52 = vmul.f32 0.125, %v984_v56  ;;  %v990_v60 = vadd.f32 %v989_v57, %v988_v55  ;;  %v1215_v55 = vld [vmem:[#allocation5 + $0x1080] sm:$0xff] }
 0x32a   :  { %v1214_v56 = vld [vmem:[#allocation5 + $0x1060] sm:$0xff] }
 0x32b   :  { %v993_v61 = vsub.f32 %v973_v45, %v991_v52  ;;  %v992_v62 = vmul.f32 0.125, %v990_v60  ;;  %v1226_v45 = vld [vmem:[#allocation5 + $0x11e0] sm:$0xff] }
 0x32c   :  { %1614 = vmatpush3.msra.mxu0 %v1226_v45  ;;  %v1213_v57 = vld [vmem:[#allocation5 + $0x1040] sm:$0xff] }
 0x32d   :  { %v995_v63 = vmul.f32 %v993_v61, %v993_v61  ;;  %v994_v1 = vsub.f32 %v975_v48, %v992_v62  ;;  %v1022_v33 = vmul.f32 %v1015_v11, %v993_v61  ;;  %1615 = vmatprep.subr.mxu0 %v1850_v0  ;;  %v1223_v48 = vld [vmem:[#allocation5 + $0x1180] sm:$0xff]  ;;  %v1465_v62 = vld [vmem:[#allocation7 + $0x13] ss:$0 sm:$0xff]  ;;  %v1466_v11 = vld [vmem:[#allocation7 + $0x14] ss:$0 sm:$0xff] }
 0x32e   :  { %1616 = vmatpush3.msra.mxu0 %v1225_v46  ;;  %v1212_v52 = vld [vmem:[#allocation5 + $0x1020] sm:$0xff] }
 0x32f   :  { %v997_v53 = vrot.slane %v995_v63, 4  ;;  %v996_v2 = vmul.f32 %v994_v1, %v994_v1  ;;  %v1023_v18 = vmul.f32 %v1019_v31, %v994_v1  ;;  %1617 = vmatprep.subr.mxu0 %v1850_v0  ;;  %v1211_v60 = vld [vmem:[#allocation5 + $0x1000] sm:$0xff] }
 0x330   :  { %1618 = vmatpush3.msra.mxu0 %v1224_v47  ;;  %v1349_v45 = vld [vmem:[#allocation5 + $0x1240] sm:$0xff] }
 0x331   :  { %v998_v15 = vadd.f32 %v997_v53, %v995_v63  ;;  %v1003_v4 = vrot.slane %v996_v2, 4  ;;  %1619 = vmatprep.subr.mxu0 %v1850_v0  ;;  %v1348_v46 = vld [vmem:[#allocation5 + $0x1220] sm:$0xff] }
 0x332   :  { %1620 = vmatpush3.msra.mxu0 %v1223_v48  ;;  %v1347_v47 = vld [vmem:[#allocation5 + $0x1200] sm:$0xff]  ;;  %v1469_v48 = vld [vmem:[#allocation7 + $0x16] ss:$0 sm:$0xff] }
 0x333   :  { %v999_v5 = vrot.slane %v998_v15, 2  ;;  %v1004_v6 = vadd.f32 %v1003_v4, %v996_v2  ;;  %1621 = vmatprep.subr.mxu0 %v1850_v0 }
 0x334   :  { %1622 = vmatpush3.msra.mxu0 %v1222_v32 }
 0x335   :  { %v1000_v58 = vadd.f32 %v999_v5, %v998_v15  ;;  %v1005_v8 = vrot.slane %v1004_v6, 2  ;;  %1623 = vmatprep.subr.mxu0 %v1850_v0 }
 0x336   :  { %1624 = vmatpush3.msra.mxu0 %v1221_v36 }
 0x337   :  { %v1001_v21 = vrot.slane %v1000_v58, 1  ;;  %v1006_v59 = vadd.f32 %v1005_v8, %v1004_v6  ;;  %1625 = vmatprep.subr.mxu0 %v1850_v0 }
 0x338   :  { %1626 = vmatpush3.msra.mxu0 %v1220_v37 }
 0x339   :  { %v1002_v10 = vadd.f32 %v1001_v21, %v1000_v58  ;;  %v1007_v13 = vrot.slane %v1006_v59, 1  ;;  %1627 = vmatprep.subr.mxu0 %v1850_v0 }
 0x33a   :  { %1628 = vmatpush3.msra.mxu0 %v1219_v49 }
 0x33b   :  { %v1009_v23 = vmul.f32 0.125, %v1002_v10  ;;  %v1008_v26 = vadd.f32 %v1007_v13, %v1006_v59  ;;  %1629 = vmatprep.subr.mxu0 %v1850_v0 }
 0x33c   :  { %1630 = vmatpush3.msra.mxu0 %v1218_v50 }
 0x33d   :  { %v1024_v27 = vadd.f32 1e-05, %v1009_v23  ;;  %v1010_v3 = vmul.f32 0.125, %v1008_v26  ;;  %1631 = vmatprep.subr.mxu0 %v1850_v0 }
 0x33e   :  { %1632 = vmatpush3.msra.mxu0 %v1217_v51 }
 0x33f   :  { %1733 = vrsqrt.f32 %v1024_v27  ;;  %v1025_v29 = vadd.f32 1e-05, %v1010_v3  ;;  %1633 = vmatprep.subr.mxu0 %v1850_v0 }
 0x340   :  { %1634 = vmatpush3.msra.mxu0 %v1216_v54 }
 0x341   :  { %1735 = vrsqrt.f32 %v1025_v29  ;;  %1635 = vmatprep.subr.mxu0 %v1850_v0 }
 0x342   :  { %1636 = vmatpush3.msra.mxu0 %v1215_v55 }
 0x343   :  { %1637 = vmatprep.subr.mxu0 %v1850_v0 }
 0x344   :  { %1638 = vmatpush3.msra.mxu0 %v1214_v56 }
 0x345   :  { %1639 = vmatprep.subr.mxu0 %v1850_v0 }
 0x346   :  { %1640 = vmatpush3.msra.mxu0 %v1213_v57 }
 0x347   :  { %1641 = vmatprep.subr.mxu0 %v1850_v0 }
 0x348   :  { %1642 = vmatpush3.msra.mxu0 %v1212_v52 }
 0x349   :  { %1643 = vmatprep.subr.mxu0 %v1850_v0 }
 0x34a   :  { %1644 = vmatpush3.msra.mxu0 %v1211_v60 }
 0x34c   :  { %v1734_v35 = vpop.eup %1733 }
 0x34d   :  { %v1028_v7 = vmul.f32 %v1734_v35, %v1022_v33  ;;  %v1467_v33 = vld [vmem:[#allocation7 + $0x15] ss:$0 sm:$0xff] }
 0x34e   :  { %v1736_v38 = vpop.eup %1735 }
 0x34f   :  { %v1029_v39 = vmul.f32 %v1736_v38, %v1023_v18  ;;  %v1041_v40 = vadd.f32 %v1034_v34, %v1028_v7 }
 0x351   :  { %v1042_v41 = vadd.f32 %v1038_v20, %v1029_v39  ;;  %v1463_v9 = vmul.f32 -1.702, %v1041_v40 }
 0x353   :  { %v1464_v22 = vmul.f32 -1.702, %v1042_v41  ;;  %v1047_v12 = vmul.f32 1.442695, %v1463_v9  ;;  %v1361_v9 = vld [vmem:[#allocation5 + $0x13c0] sm:$0xff] }
 0x355   :  { %v1049_v28 = vmul.f32 1.442695, %v1464_v22  ;;  %1737 = vpow2.f32 %v1047_v12  ;;  %v1360_v22 = vld [vmem:[#allocation5 + $0x13a0] sm:$0xff] }
 0x356   :  { %v1359_v12 = vld [vmem:[#allocation5 + $0x1380] sm:$0xff] }
 0x357   :  { %1739 = vpow2.f32 %v1049_v28  ;;  %v1358_v28 = vld [vmem:[#allocation5 + $0x1360] sm:$0xff] }
 0x362   :  { %v1738_v24 = vpop.eup %1737 }
 0x363   :  { %v1051_v25 = vadd.f32 1.0, %v1738_v24  ;;  %v1357_v24 = vld [vmem:[#allocation5 + $0x1340] sm:$0xff] }
 0x364   :  { %v1740_v16 = vpop.eup %1739 }
 0x365   :  { %v1052_v42 = vadd.f32 1.0, %v1740_v16  ;;  %1741 = vrcp.f32 %v1051_v25  ;;  %v1356_v25 = vld [vmem:[#allocation5 + $0x1320] sm:$0xff] }
 0x366   :  { %v1355_v16 = vld [vmem:[#allocation5 + $0x1300] sm:$0xff] }
 0x367   :  { %1743 = vrcp.f32 %v1052_v42  ;;  %v1354_v42 = vld [vmem:[#allocation5 + $0x12e0] sm:$0xff] }
 0x372   :  { %v1742_v14 = vpop.eup %1741 }
 0x373   :  { %v1057_v17 = vmul.f32 %v1742_v14, %v1041_v40  ;;  %v1353_v14 = vld [vmem:[#allocation5 + $0x12c0] sm:$0xff] }
 0x374   :  { %v1744_v43 = vpop.eup %1743 }
 0x375   :  { %v1058_v44 = vmul.f32 %v1744_v43, %v1042_v41  ;;  %v1362_v41 = vld [vmem:[#allocation5 + $0x13e0] sm:$0xff] }
 0x376   :  { %v1352_v43 = vld [vmem:[#allocation5 + $0x12a0] sm:$0xff] }
 0x377   :  { %1162 = vmatprep.mubr.f32.mxu1 %v1058_v44  ;;  %v1351_v44 = vld [vmem:[#allocation5 + $0x1280] sm:$0xff] }
 0x378   :  { %1163 = vmatmul.mubr.f32.vlgmr.msra.gmra.mxu1 %v1057_v17  ;;  %v1350_v17 = vld [vmem:[#allocation5 + $0x1260] sm:$0xff] }
 0x379   :  { %1680 = vmatprep.mubr.msk.f32.mxu1 %vm1851_vm7, %v1850_v0  ;;  %1649 = vmatpush3.msra.mxu1 %v1362_v41 }
 0x37a   :  { %1650 = vmatprep.subr.mxu1 %v1850_v0 }
 0x37b   :  { %1651 = vmatpush3.msra.mxu1 %v1361_v9 }
 0x37c   :  { %1652 = vmatprep.subr.mxu1 %v1850_v0 }
 0x37d   :  { %1653 = vmatpush3.msra.mxu1 %v1360_v22 }
 0x37e   :  { %1654 = vmatprep.subr.mxu1 %v1850_v0 }
 0x37f   :  { %1655 = vmatpush3.msra.mxu1 %v1359_v12 }
 0x380   :  { %1656 = vmatprep.subr.mxu1 %v1850_v0 }
 0x381   :  { %1657 = vmatpush3.msra.mxu1 %v1358_v28 }
 0x382   :  { %1658 = vmatprep.subr.mxu1 %v1850_v0 }
 0x383   :  { %1659 = vmatpush3.msra.mxu1 %v1357_v24 }
 0x384   :  { %1660 = vmatprep.subr.mxu1 %v1850_v0 }
 0x385   :  { %1661 = vmatpush3.msra.mxu1 %v1356_v25 }
 0x386   :  { %1662 = vmatprep.subr.mxu1 %v1850_v0 }
 0x387   :  { %1663 = vmatpush3.msra.mxu1 %v1355_v16 }
 0x388   :  { %1664 = vmatprep.subr.mxu1 %v1850_v0 }
 0x389   :  { %1665 = vmatpush3.msra.mxu1 %v1354_v42 }
 0x38a   :  { %1666 = vmatprep.subr.mxu1 %v1850_v0 }
 0x38b   :  { %1667 = vmatpush3.msra.mxu1 %v1353_v14 }
 0x38c   :  { %1668 = vmatprep.subr.mxu1 %v1850_v0 }
 0x38d   :  { %1669 = vmatpush3.msra.mxu1 %v1352_v43 }
 0x38e   :  { %1670 = vmatprep.subr.mxu1 %v1850_v0 }
 0x38f   :  { %1671 = vmatpush3.msra.mxu1 %v1351_v44 }
 0x390   :  { %1672 = vmatprep.subr.mxu1 %v1850_v0 }
 0x391   :  { %1673 = vmatpush3.msra.mxu1 %v1350_v17 }
 0x392   :  { %1674 = vmatprep.subr.mxu1 %v1850_v0 }
 0x393   :  { %1675 = vmatpush3.msra.mxu1 %v1349_v45 }
 0x394   :  { %1676 = vmatprep.subr.mxu1 %v1850_v0 }
 0x395   :  { %1677 = vmatpush3.msra.mxu1 %v1348_v46 }
 0x396   :  { %1678 = vmatprep.subr.mxu1 %v1850_v0 }
 0x397   :  { %1679 = vmatpush3.msra.mxu1 %v1347_v47 }
 0x438   :  { %v1576_v61 = vpop.f32.mrf.mxu1 }
 0x43a   :  { %v1577_v63 = vpop.f32.mrf.mxu1 }
 0x43b   :  { %v1578_v1 = vadd.f32 %v1577_v63, %v1576_v61 }
 0x43d   :  { %v1165_v53 = vadd.f32 %v1578_v1, %v1465_v62 }
 0x43f   :  { %v1170_v2 = vrot.slane %v1165_v53, 4 }
 0x441   :  { %v1171_v15 = vadd.f32 %v1170_v2, %v1165_v53 }
 0x443   :  { %v1172_v4 = vrot.slane %v1171_v15, 2 }
 0x445   :  { %v1173_v5 = vadd.f32 %v1172_v4, %v1171_v15  ;;  %v1470_v4 = vld [vmem:[#allocation7 + $0x17] ss:$0 sm:$0xff] }
 0x447   :  { %v1174_v6 = vrot.slane %v1173_v5, 1 }
 0x449   :  { %v1175_v58 = vadd.f32 %v1174_v6, %v1173_v5 }
 0x44b   :  { %v1176_v8 = vmul.f32 0.125, %v1175_v58  ;;  %v1471_v58 = vld [vmem:[#allocation7 + $0x18] ss:$0 sm:$0xff] }
 0x44d   :  { %v1177_v21 = vsub.f32 %v1165_v53, %v1176_v8 }
 0x44f   :  { %v1178_v59 = vmul.f32 %v1177_v21, %v1177_v21  ;;  %v1192_v19 = vmul.f32 %v1466_v11, %v1177_v21 }
 0x451   :  { %v1179_v10 = vrot.slane %v1178_v59, 4 }
 0x453   :  { %v1180_v13 = vadd.f32 %v1179_v10, %v1178_v59 }
 0x455   :  { %v1181_v23 = vrot.slane %v1180_v13, 2 }
 0x457   :  { %v1182_v26 = vadd.f32 %v1181_v23, %v1180_v13 }
 0x459   :  { %v1183_v27 = vrot.slane %v1182_v26, 1 }
 0x45b   :  { %v1184_v3 = vadd.f32 %v1183_v27, %v1182_v26 }
 0x45d   :  { %v1185_v29 = vmul.f32 0.125, %v1184_v3  ;;  %v1473_v3 = vld [vmem:[#allocation7 + $0x19] ss:$0 sm:$0xff] }
 0x45f   :  { %v1193_v30 = vadd.f32 1e-05, %v1185_v29 }
 0x461   :  { %1745 = vrsqrt.f32 %v1193_v30 }
 0x46e   :  { %v1746_v31 = vpop.eup %1745 }
 0x46f   :  { %v1195_v34 = vmul.f32 %v1746_v31, %v1192_v19 }
 0x471   :  { %v1202_v35 = vadd.f32 %v1467_v33, %v1195_v34 }
 0x473   :  { %v1468_v7 = vmul.f32 -1.702, %v1202_v35 }
 0x475   :  { %v1205_v18 = vmul.f32 1.442695, %v1468_v7 }
 0x477   :  { %1747 = vpow2.f32 %v1205_v18 }
 0x484   :  { %v1748_v20 = vpop.eup %1747 }
 0x485   :  { %v1207_v38 = vadd.f32 1.0, %v1748_v20 }
 0x487   :  { %1749 = vrcp.f32 %v1207_v38 }
 0x494   :  { %v1750_v39 = vpop.eup %1749 }
 0x495   :  { %v1210_v40 = vmul.f32 %v1750_v39, %v1202_v35 }
 0x497   :  { %1646 = vmatmul.mubr.f32.vlgmr.msra.gmra.mxu0 %v1210_v40 }
 0x557   :  { %v1300_v32 = vpop.f32.mrf.mxu0 }
 0x558   :  { %v1301_v36 = vadd.f32 %v1469_v48, %v1300_v32 }
 0x559   :  { %v1647_v37 = vpop.f32.mrf.mxu0 }
 0x55a   :  { %v1306_v49 = vrot.slane %v1301_v36, 4 }
 0x55c   :  { %v1307_v50 = vadd.f32 %v1306_v49, %v1301_v36 }
 0x55e   :  { %v1308_v51 = vrot.slane %v1307_v50, 2 }
 0x560   :  { %v1309_v54 = vadd.f32 %v1308_v51, %v1307_v50 }
 0x562   :  { %v1310_v55 = vrot.slane %v1309_v54, 1 }
 0x564   :  { %v1311_v56 = vadd.f32 %v1310_v55, %v1309_v54 }
 0x566   :  { %v1312_v57 = vmul.f32 0.125, %v1311_v56 }
 0x568   :  { %v1313_v52 = vsub.f32 %v1301_v36, %v1312_v57 }
 0x56a   :  { %v1314_v60 = vmul.f32 %v1313_v52, %v1313_v52  ;;  %v1328_v5 = vmul.f32 %v1470_v4, %v1313_v52 }
 0x56c   :  { %v1315_v61 = vrot.slane %v1314_v60, 4 }
 0x56e   :  { %v1316_v62 = vadd.f32 %v1315_v61, %v1314_v60 }
 0x570   :  { %v1317_v63 = vrot.slane %v1316_v62, 2 }
 0x572   :  { %v1318_v1 = vadd.f32 %v1317_v63, %v1316_v62 }
 0x574   :  { %v1319_v53 = vrot.slane %v1318_v1, 1 }
 0x576   :  { %v1320_v0 = vadd.f32 %v1319_v53, %v1318_v1 }
 0x578   :  { %v1321_v2 = vmul.f32 0.125, %v1320_v0 }
 0x57a   :  { %v1329_v15 = vadd.f32 1e-05, %v1321_v2 }
 0x57c   :  { %1751 = vrsqrt.f32 %v1329_v15 }
 0x589   :  { %v1752_v6 = vpop.eup %1751 }
 0x58a   :  { %v1331_v8 = vmul.f32 %v1752_v6, %v1328_v5 }
 0x58c   :  { %v1338_v21 = vadd.f32 %v1471_v58, %v1331_v8 }
 0x58e   :  { %v1472_v59 = vmul.f32 -1.702, %v1338_v21 }
 0x590   :  { %v1341_v10 = vmul.f32 1.442695, %v1472_v59 }
 0x592   :  { %1753 = vpow2.f32 %v1341_v10 }
 0x59f   :  { %v1754_v13 = vpop.eup %1753 }
 0x5a0   :  { %v1343_v23 = vadd.f32 1.0, %v1754_v13 }
 0x5a2   :  { %1755 = vrcp.f32 %v1343_v23 }
 0x5af   :  { %v1756_v26 = vpop.eup %1755 }
 0x5b0   :  { %v1346_v27 = vmul.f32 %v1756_v26, %v1338_v21 }
 0x5b2   :  { %1681 = vmatmul.mubr.f32.vlgmr.msra.gmra.mxu1 %v1346_v27 }
 0x672   :  { %v1436_v29 = vpop.f32.mrf.mxu1 }
 0x673   :  { %v1437_v30 = vadd.f32 %v1473_v3, %v1436_v29 }
 0x674   :  { %v1682_v11 = vpop.f32.mrf.mxu1 }
 0x675   :  { %1441 = vst [vmem:[#allocation8 + $0x8] sm:$0xff] %v1437_v30 }
 0x676   :  { %1828 = shalt.err (!%p1825_p5)
}
 0x677   :  { %1451 = dma.vmem_to_hbm [thread:$0]  %s1449_s2, 256, %s1990_s3, [#allocation4]  }
 0x678   :  { %1841 = dma.done.wait [#allocation4], 256  }
 0x679   :  { %1842 = vsyncadd [#allocation4], 4294967040 }
 0x67a   :  { %1455 = vsyncpa [#allocation3], 1 }
 0x67b   :  { %1456 = vsyncpa [#allocation6], 1 }
 0x67c   :  { %1457 = vsyncpa [#allocation4], 1 }

</bundles_post_ra>
